<compile_context>
chip_gen: v5e
topology: v5e:2x2
jax: 0.10.0
libtpu: 0.0.40
codegen_flags: <defaults>
</compile_context>

<pallas_src>
import jax
import jax.numpy as jnp
from jax.experimental import pallas as pl
from jax.experimental.pallas import tpu as pltpu


def _round_up(v, m):
    return ((v + m - 1) // m) * m


def _pairs_pruning_kernel(xi_ref, xj_ref, w1_ref, b1_ref, w2_ref, b2_ref, s_ref):
    """Packed 2-layer MLP heads + MXU pair scoring for one (row-tile, col-tile) block."""
    out_p = w2_ref.shape[1] // 2   # padded per-head embedding width

    def packed_mlp(x):
        # Layer 1: both heads side-by-side -> [tm, 2*HID_p], f32 accumulation.
        h = jnp.dot(x, w1_ref[...], preferred_element_type=jnp.float32) + b1_ref[...]
        h = jnp.maximum(h, 0.0)
        # Layer 2: block-diagonal packed weights -> [tm, 2*OUT_p] (cols [:out_p] = Ws
        # head output, cols [out_p:] = Wo head output).
        y = jnp.dot(h.astype(w2_ref.dtype), w2_ref[...],
                    preferred_element_type=jnp.float32) + b2_ref[...]
        return y

    sbj = packed_mlp(xi_ref[...])[:, :out_p]     # Ws head on the subject-row tile
    obj = packed_mlp(xj_ref[...])[:, out_p:]     # Wo head on the object-row tile

    # Pair scoring on the MXU: logits[i, j] = <sbj_i, obj_j>; lane-dense [tm, tm] store.
    logits = jax.lax.dot_general(
        sbj.astype(w1_ref.dtype), obj.astype(w1_ref.dtype),
        dimension_numbers=(((1,), (1,)), ((), ())),
        preferred_element_type=jnp.float32)
    s_ref[...] = jax.nn.sigmoid(logits).astype(s_ref.dtype)


def _pack_params(params, in_dims, hid, out, in_p, hid_p, out_p, compute_dtype):
    """Pack Ws / Wo into two wide, lane-padded weight slabs (+ f32 biases)."""
    # Layer 1: [IN_p, 2*HID_p]; cols [0:hid_p) = Ws, cols [hid_p:) = Wo.
    w1 = jnp.zeros((in_p, 2 * hid_p), compute_dtype)
    w1 = w1.at[:in_dims, :hid].set(params["ws1"].astype(compute_dtype))
    w1 = w1.at[:in_dims, hid_p:hid_p + hid].set(params["wo1"].astype(compute_dtype))

    b1 = jnp.zeros((1, 2 * hid_p), jnp.float32)
    b1 = b1.at[:, :hid].set(params["bs1"].astype(jnp.float32).reshape(1, hid))
    b1 = b1.at[:, hid_p:hid_p + hid].set(params["bo1"].astype(jnp.float32).reshape(1, hid))

    # Layer 2: block-diagonal [2*HID_p, 2*OUT_p] so one matmul yields [sbj | obj].
    w2 = jnp.zeros((2 * hid_p, 2 * out_p), compute_dtype)
    w2 = w2.at[:hid, :out].set(params["ws2"].astype(compute_dtype))
    w2 = w2.at[hid_p:hid_p + hid, out_p:out_p + out].set(params["wo2"].astype(compute_dtype))

    b2 = jnp.zeros((1, 2 * out_p), jnp.float32)
    b2 = b2.at[:, :out].set(params["bs2"].astype(jnp.float32).reshape(1, out))
    b2 = b2.at[:, out_p:out_p + out].set(params["bo2"].astype(jnp.float32).reshape(1, out))
    return w1, b1, w2, b2


def pairs_pruning_pair_scores(det_dists, edge_inds, params, *,
                              block_rows=512, compute_dtype=jnp.bfloat16):
    """Returns pair_scores of shape [E, 1] (float32), matching the PyTorch tensor path.

    Computes the full dense N x N score matrix on the MXU and gathers the E requested
    entries (the module enumerates ~all ordered pairs, so E ~= N^2); a per-edge path
    would only be preferable for E << N^2.
    """
    n, in_dims = det_dists.shape
    hid = params["ws1"].shape[1]
    out = params["ws2"].shape[1]
    e = edge_inds.shape[0]

    # Lane-pad feature dims to 128; pad N up to a multiple of the row tile.
    in_p = _round_up(in_dims, 128)
    hid_p = _round_up(hid, 128)
    out_p = _round_up(out, 128)
    tm = min(block_rows, _round_up(n, 128))
    n_pad = _round_up(n, tm)
    n_tiles = n_pad // tm

    x = jnp.zeros((n_pad, in_p), compute_dtype)
    x = x.at[:n, :in_dims].set(det_dists.astype(compute_dtype))

    w1, b1, w2, b2 = _pack_params(params, in_dims, hid, out,
                                  in_p, hid_p, out_p, compute_dtype)

    scores_full = pl.pallas_call(
        _pairs_pruning_kernel,
        grid_spec=pltpu.PrefetchScalarGridSpec(
            num_scalar_prefetch=0,
            grid=(n_tiles, n_tiles),
            in_specs=[
                pl.BlockSpec((tm, in_p), lambda i, j: (i, 0)),              # subject rows
                pl.BlockSpec((tm, in_p), lambda i, j: (j, 0)),              # object rows
                pl.BlockSpec((in_p, 2 * hid_p), lambda i, j: (0, 0)),       # packed W1
                pl.BlockSpec((1, 2 * hid_p), lambda i, j: (0, 0)),          # packed b1
                pl.BlockSpec((2 * hid_p, 2 * out_p), lambda i, j: (0, 0)),  # packed W2
                pl.BlockSpec((1, 2 * out_p), lambda i, j: (0, 0)),          # packed b2
            ],
            out_specs=pl.BlockSpec((tm, tm), lambda i, j: (i, j)),
        ),
        out_shape=jax.ShapeDtypeStruct((n_pad, n_pad), jnp.float32),
        compiler_params=pltpu.CompilerParams(
            dimension_semantics=("parallel", "parallel"),
            vmem_limit_bytes=32 * 1024 * 1024),
    )(x, x, w1, b1, w2, b2)

    # E-scalar gather of the requested pairs (edge_inds[:, 1]=subject, [:, 2]=object).
    # Note: jnp indexing clamps out-of-range indices, whereas PyTorch would raise.
    pair_scores = scores_full[edge_inds[:, 1], edge_inds[:, 2]].reshape(e, 1)
    return pair_scores


def _reference(det_dists, edge_inds, params):
    """Pure-JAX f32 reference mirroring the PyTorch forward tensor path."""
    def head(x, w1, b1, w2, b2):
        h = jnp.maximum(x @ w1 + b1, 0.0)
        return h @ w2 + b2

    sbj_all = head(det_dists, params["ws1"], params["bs1"], params["ws2"], params["bs2"])
    obj_all = head(det_dists, params["wo1"], params["bo1"], params["wo2"], params["bo2"])
    sbj = sbj_all[edge_inds[:, 1]]
    obj = obj_all[edge_inds[:, 2]]
    return jax.nn.sigmoid(jnp.sum(sbj * obj, axis=-1, keepdims=True))


if __name__ == "__main__":
    key = jax.random.PRNGKey(0)
    k = jax.random.split(key, 12)

    # Small shapes consistent with the module: N detections, input_dims = class-dist size,
    # output_dims = pair embedding width, E candidate edges.  block_rows=128 so the demo
    # exercises a 2x2 tile grid (N pads to 256).
    N, INPUT_DIMS, OUTPUT_DIMS, E = 200, 72, 32, 256
    HIDDEN = OUTPUT_DIMS * 2

    det_dists = jax.random.normal(k[0], (N, INPUT_DIMS), dtype=jnp.float32)

    # edge_inds: [E, 3] = (image index, subject det index, object det index)
    img_idx = jnp.zeros((E, 1), dtype=jnp.int32)
    sbj_idx = jax.random.randint(k[1], (E, 1), 0, N, dtype=jnp.int32)
    obj_idx = jax.random.randint(k[2], (E, 1), 0, N, dtype=jnp.int32)
    edge_inds = jnp.concatenate([img_idx, sbj_idx, obj_idx], axis=-1)

    def init_linear(kw, kb, fan_in, fan_out):
        bound = 1.0 / jnp.sqrt(fan_in)
        w = jax.random.uniform(kw, (fan_in, fan_out), jnp.float32, -bound, bound)
        b = jax.random.uniform(kb, (1, fan_out), jnp.float32, -bound, bound)
        return w, b

    ws1, bs1 = init_linear(k[3], k[4], INPUT_DIMS, HIDDEN)
    ws2, bs2 = init_linear(k[5], k[6], HIDDEN, OUTPUT_DIMS)
    wo1, bo1 = init_linear(k[7], k[8], INPUT_DIMS, HIDDEN)
    wo2, bo2 = init_linear(k[9], k[10], HIDDEN, OUTPUT_DIMS)

    params = dict(ws1=ws1, bs1=bs1, ws2=ws2, bs2=bs2,
                  wo1=wo1, bo1=bo1, wo2=wo2, bo2=bo2)

    ref = _reference(det_dists, edge_inds, params)

    # Exact f32 path (same math as PyTorch, tight tolerance).
    scores_f32 = jax.block_until_ready(
        pairs_pruning_pair_scores(det_dists, edge_inds, params,
                                  block_rows=128, compute_dtype=jnp.float32))
    assert scores_f32.shape == (E, 1), scores_f32.shape
    assert jnp.allclose(scores_f32, ref, atol=1e-4, rtol=1e-4), "f32 mismatch vs reference"

    # Default bf16-MXU path (per perf guidance): bf16 dot inputs, f32 accumulation.
    scores_bf16 = jax.block_until_ready(
        pairs_pruning_pair_scores(det_dists, edge_inds, params,
                                  block_rows=128, compute_dtype=jnp.bfloat16))
    assert scores_bf16.shape == (E, 1), scores_bf16.shape
    assert jnp.max(jnp.abs(scores_bf16 - ref)) < 3e-2, "bf16 mismatch vs reference"

    print("KERNEL_OK")
</pallas_src>

<mosaic_0001>
module attributes {stable_mosaic.version = 11 : i64} {
  func.func @_pairs_pruning_kernel(%arg0: i32, %arg1: i32, %arg2: memref<128x128xf32, #tpu.memory_space<vmem>>, %arg3: memref<128x128xf32, #tpu.memory_space<vmem>>, %arg4: memref<128x256xf32, #tpu.memory_space<vmem>>, %arg5: memref<1x256xf32, #tpu.memory_space<vmem>>, %arg6: memref<256x256xf32, #tpu.memory_space<vmem>>, %arg7: memref<1x256xf32, #tpu.memory_space<vmem>>, %arg8: memref<128x128xf32, #tpu.memory_space<vmem>>) attributes {dimension_semantics = [#tpu.dimension_semantics<parallel>, #tpu.dimension_semantics<parallel>], iteration_bounds = array<i64: 2, 2>, scalar_prefetch = 0 : i64, scratch_operands = 0 : i64, tpu.core_type = #tpu.core_type<tc>, window_params = [{transform_indices = @transform_0, window_bounds = array<i64: 128, 128>}, {transform_indices = @transform_1, window_bounds = array<i64: 128, 128>}, {pipeline_mode = #tpu.pipeline_mode<synchronous>, transform_indices = @transform_2, window_bounds = array<i64: 128, 256>}, {pipeline_mode = #tpu.pipeline_mode<synchronous>, transform_indices = @transform_3, window_bounds = array<i64: 1, 256>}, {pipeline_mode = #tpu.pipeline_mode<synchronous>, transform_indices = @transform_4, window_bounds = array<i64: 256, 256>}, {pipeline_mode = #tpu.pipeline_mode<synchronous>, transform_indices = @transform_5, window_bounds = array<i64: 1, 256>}, {transform_indices = @transform_6, window_bounds = array<i64: 128, 128>}]} {
    %c0 = arith.constant 0 : index
    %c0_0 = arith.constant 0 : index
    %0 = vector.load %arg2[%c0, %c0_0] : memref<128x128xf32, #tpu.memory_space<vmem>>, vector<128x128xf32>
    %c0_1 = arith.constant 0 : index
    %c0_2 = arith.constant 0 : index
    %1 = vector.load %arg4[%c0_1, %c0_2] : memref<128x256xf32, #tpu.memory_space<vmem>>, vector<128x256xf32>
    %cst = arith.constant dense<0.000000e+00> : vector<128x256xf32>
    %2 = tpu.matmul %0, %1, %cst {dimension_numbers = #tpu.dot_dimension_numbers<[1], [0], [0], [1], [0, 0, 1, 1], [], []>} : vector<128x128xf32>, vector<128x256xf32>, vector<128x256xf32> -> vector<128x256xf32>
    %c0_3 = arith.constant 0 : index
    %c0_4 = arith.constant 0 : index
    %3 = vector.load %arg5[%c0_3, %c0_4] : memref<1x256xf32, #tpu.memory_space<vmem>>, vector<1x256xf32>
    %4 = vector.broadcast %3 : vector<1x256xf32> to vector<128x256xf32>
    %5 = arith.addf %2, %4 : vector<128x256xf32>
    %cst_5 = arith.constant 0.000000e+00 : f32
    %6 = vector.broadcast %cst_5 : f32 to vector<128x256xf32>
    %7 = arith.maximumf %5, %6 : vector<128x256xf32>
    %c0_6 = arith.constant 0 : index
    %c0_7 = arith.constant 0 : index
    %8 = vector.load %arg6[%c0_6, %c0_7] : memref<256x256xf32, #tpu.memory_space<vmem>>, vector<256x256xf32>
    %cst_8 = arith.constant dense<0.000000e+00> : vector<128x256xf32>
    %9 = tpu.matmul %7, %8, %cst_8 {dimension_numbers = #tpu.dot_dimension_numbers<[1], [0], [0], [1], [0, 0, 1, 1], [], []>} : vector<128x256xf32>, vector<256x256xf32>, vector<128x256xf32> -> vector<128x256xf32>
    %c0_9 = arith.constant 0 : index
    %c0_10 = arith.constant 0 : index
    %10 = vector.load %arg7[%c0_9, %c0_10] : memref<1x256xf32, #tpu.memory_space<vmem>>, vector<1x256xf32>
    %11 = vector.broadcast %10 : vector<1x256xf32> to vector<128x256xf32>
    %12 = arith.addf %9, %11 : vector<128x256xf32>
    %13 = vector.extract_strided_slice %12 {offsets = [0, 0], sizes = [128, 128], strides = [1, 1]} : vector<128x256xf32> to vector<128x128xf32>
    %c0_11 = arith.constant 0 : index
    %c0_12 = arith.constant 0 : index
    %14 = vector.load %arg3[%c0_11, %c0_12] : memref<128x128xf32, #tpu.memory_space<vmem>>, vector<128x128xf32>
    %c0_13 = arith.constant 0 : index
    %c0_14 = arith.constant 0 : index
    %15 = vector.load %arg4[%c0_13, %c0_14] : memref<128x256xf32, #tpu.memory_space<vmem>>, vector<128x256xf32>
    %cst_15 = arith.constant dense<0.000000e+00> : vector<128x256xf32>
    %16 = tpu.matmul %14, %15, %cst_15 {dimension_numbers = #tpu.dot_dimension_numbers<[1], [0], [0], [1], [0, 0, 1, 1], [], []>} : vector<128x128xf32>, vector<128x256xf32>, vector<128x256xf32> -> vector<128x256xf32>
    %c0_16 = arith.constant 0 : index
    %c0_17 = arith.constant 0 : index
    %17 = vector.load %arg5[%c0_16, %c0_17] : memref<1x256xf32, #tpu.memory_space<vmem>>, vector<1x256xf32>
    %18 = vector.broadcast %17 : vector<1x256xf32> to vector<128x256xf32>
    %19 = arith.addf %16, %18 : vector<128x256xf32>
    %cst_18 = arith.constant 0.000000e+00 : f32
    %20 = vector.broadcast %cst_18 : f32 to vector<128x256xf32>
    %21 = arith.maximumf %19, %20 : vector<128x256xf32>
    %c0_19 = arith.constant 0 : index
    %c0_20 = arith.constant 0 : index
    %22 = vector.load %arg6[%c0_19, %c0_20] : memref<256x256xf32, #tpu.memory_space<vmem>>, vector<256x256xf32>
    %cst_21 = arith.constant dense<0.000000e+00> : vector<128x256xf32>
    %23 = tpu.matmul %21, %22, %cst_21 {dimension_numbers = #tpu.dot_dimension_numbers<[1], [0], [0], [1], [0, 0, 1, 1], [], []>} : vector<128x256xf32>, vector<256x256xf32>, vector<128x256xf32> -> vector<128x256xf32>
    %c0_22 = arith.constant 0 : index
    %c0_23 = arith.constant 0 : index
    %24 = vector.load %arg7[%c0_22, %c0_23] : memref<1x256xf32, #tpu.memory_space<vmem>>, vector<1x256xf32>
    %25 = vector.broadcast %24 : vector<1x256xf32> to vector<128x256xf32>
    %26 = arith.addf %23, %25 : vector<128x256xf32>
    %27 = vector.extract_strided_slice %26 {offsets = [0, 128], sizes = [128, 128], strides = [1, 1]} : vector<128x256xf32> to vector<128x128xf32>
    %cst_24 = arith.constant dense<0.000000e+00> : vector<128x128xf32>
    %28 = tpu.matmul %13, %27, %cst_24 {dimension_numbers = #tpu.dot_dimension_numbers<[1], [1], [0], [0], [0, 0, 1, 0], [], []>} : vector<128x128xf32>, vector<128x128xf32>, vector<128x128xf32> -> vector<128x128xf32>
    %29 = arith.negf %28 : vector<128x128xf32>
    %30 = math.exp %29 : vector<128x128xf32>
    %cst_25 = arith.constant 1.000000e+00 : f32
    %31 = vector.broadcast %cst_25 : f32 to vector<128x128xf32>
    %32 = arith.addf %31, %30 : vector<128x128xf32>
    %33 = arith.divf %31, %32 : vector<128x128xf32>
    %c0_26 = arith.constant 0 : index
    %c0_27 = arith.constant 0 : index
    %34 = vector.load %arg8[%c0_26, %c0_27] : memref<128x128xf32, #tpu.memory_space<vmem>>, vector<128x128xf32>
    tpu.vector_store %arg8[%c0_26, %c0_27], %33 {strides = array<i32>} : memref<128x128xf32, #tpu.memory_space<vmem>>, vector<128x128xf32>,
    return
  }
  func.func @transform_0(%arg0: i32, %arg1: i32) -> (i32, i32) {
    %c0_i32 = arith.constant 0 : i32
    %c0_i32_0 = arith.constant 0 : i32
    return %arg0, %c0_i32 : i32, i32
  }
  func.func @transform_1(%arg0: i32, %arg1: i32) -> (i32, i32) {
    %c0_i32 = arith.constant 0 : i32
    %c0_i32_0 = arith.constant 0 : i32
    return %arg1, %c0_i32 : i32, i32
  }
  func.func @transform_2(%arg0: i32, %arg1: i32) -> (i32, i32) {
    %c0_i32 = arith.constant 0 : i32
    %c0_i32_0 = arith.constant 0 : i32
    %c0_i32_1 = arith.constant 0 : i32
    return %c0_i32, %c0_i32_0 : i32, i32
  }
  func.func @transform_3(%arg0: i32, %arg1: i32) -> (i32, i32) {
    %c0_i32 = arith.constant 0 : i32
    %c0_i32_0 = arith.constant 0 : i32
    %c0_i32_1 = arith.constant 0 : i32
    return %c0_i32, %c0_i32_0 : i32, i32
  }
  func.func @transform_4(%arg0: i32, %arg1: i32) -> (i32, i32) {
    %c0_i32 = arith.constant 0 : i32
    %c0_i32_0 = arith.constant 0 : i32
    %c0_i32_1 = arith.constant 0 : i32
    return %c0_i32, %c0_i32_0 : i32, i32
  }
  func.func @transform_5(%arg0: i32, %arg1: i32) -> (i32, i32) {
    %c0_i32 = arith.constant 0 : i32
    %c0_i32_0 = arith.constant 0 : i32
    %c0_i32_1 = arith.constant 0 : i32
    return %c0_i32, %c0_i32_0 : i32, i32
  }
  func.func @transform_6(%arg0: i32, %arg1: i32) -> (i32, i32) {
    %c0_i32 = arith.constant 0 : i32
    return %arg0, %arg1 : i32, i32
  }
}

</mosaic_0001>

<bundles_post_ra>
// kernel: tpu_custom_call.1
= control target key start
LH: loop header
LB: loop body
LE: loop exit
PB: predicated region body
PF: predicated region fallthrough
CT: control target
= control target key end

     0   :  { %s3024_s0 = inlined_call_operand.hbm [shape: f32[256,128], index: 0, kind: input, shape index: {}]   ;;  %s3025_s1 = inlined_call_operand.hbm [shape: f32[256,128], index: 1, kind: input, shape index: {}]   ;;  %s3026_s2 = inlined_call_operand.hbm [shape: f32[128,256], index: 2, kind: input, shape index: {}]   ;;  %s3027_s3 = inlined_call_operand.vmem [shape: f32[1,256], index: 3, kind: input, shape index: {}]   ;;  %s3028_s4 = inlined_call_operand.hbm [shape: f32[256,256], index: 4, kind: input, shape index: {}]   ;;  %s3029_s5 = inlined_call_operand.vmem [shape: f32[1,256], index: 5, kind: input, shape index: {}]   ;;  %s3030_s6 = inlined_call_operand.hbm [shape: f32[256,256], index: 6, kind: output, shape index: {}]  }
   0x1   :  { %3045 = sst [smem:[#allocation26_spill]] %s3024_s0 }
   0x2   :  { %3046 = sst [smem:[#allocation27_spill]] %s3026_s2 }
   0x3   :  { %3047 = sst [smem:[#allocation28_spill]] %s3027_s3 }
   0x4   :  { %3048 = sst [smem:[#allocation29_spill]] %s3028_s4 }
   0x5   :  { %3049 = sst [smem:[#allocation30_spill]] %s3029_s5 }
   0x6   :  { %3050 = sst [smem:[#allocation31_spill]] %s3030_s6 }
   0x7   :  { %11 = vsyncpa [#allocation3], 0 }
   0x8   :  { %13 = vsyncpa [#allocation3 + $0x1], 0 }
   0x9   :  { %14 = vsyncpa [#allocation6], 0 }
   0xa   :  { %16 = vsyncpa [#allocation6 + $0x1], 0 }
   0xb   :  { %17 = vsyncpa [#allocation9], 0 }
   0xc   :  { %18 = vsyncpa [#allocation4], 0 }
   0xd   :  { %20 = vsyncpa [#allocation4 + $0x1], 0  ;;  %s2257_s21 = smov 0   ;;  %s2259_s22 = smov 0  }
   0xe   :  { %s2261_s23 = smov 0   ;;  %s2263_s24 = smov 0  }
   0xf   :  { %s2265_s25 = smov 0   ;;  %s2267_s26 = smov 0  }
  0x10   :  { %s2269_s27 = smov 0   ;;  %s2271_s28 = smov 0  }
  0x11   :  { %s2273_s29 = smov 0   ;;  %s2275_s30 = smov 0  }
  0x12   :  { %s2277_s7 = smov 0   ;;  %s2279_s8 = smov 0  }
  0x13   :  { %s2281_s9 = smov 0   ;;  %s2283_s10 = smov 0  }
  0x14 LB: > { %3051 = sst [smem:[#allocation16_spill]] %s2159_s21  ;;  %s2326_s11 = sadd.s32 4294967295, %s2211_s10   ;;  %s2211_s10 = sphi %s2283_s10, %s26_s10   ;;  %s2207_s9 = sphi %s2281_s9, %s3101_s9   ;;  %s2203_s8 = sphi %s2279_s8, %s3090_s8   ;;  %s2199_s7 = sphi %s2277_s7, %s3100_s7   ;;  %s2195_s30 = sphi %s2275_s30, %s3089_s30   ;;  %s2191_s29 = sphi %s2273_s29, %s3099_s29   ;;  %s2187_s28 = sphi %s2271_s28, %s3098_s28   ;;  %s2183_s27 = sphi %s2269_s27, %s3097_s27   ;;  %s2179_s26 = sphi %s2267_s26, %s3096_s26   ;;  %s2175_s25 = sphi %s2265_s25, %s3095_s25   ;;  %s2171_s24 = sphi %s2263_s24, %s3088_s24   ;;  %s2167_s23 = sphi %s2261_s23, %s3094_s23   ;;  %s2163_s22 = sphi %s2259_s22, %s3093_s22   ;;  %s2159_s21 = sphi %s2257_s21, %s3092_s21  }
  0x15   : > { %3052 = sst [smem:[#allocation17_spill]] %s2163_s22  ;;  %s1620_s12 = sadd.s32 4294967294, %s2211_s10  }
  0x16   : > { %3053 = sst [smem:[#allocation18_spill]] %s2175_s25  ;;  %p59_p0 = scmp.eq.s32.totalorder %s2326_s11, 0 }
  0x17   : > { %3054 = sst [smem:[#allocation19_spill]] %s2195_s30  ;;  %p84_p1 = scmp.ne.s32.totalorder %s2175_s25, %s2171_s24 }
  0x18   : > { %3055 = sst [smem:[#allocation20_spill]] %s2199_s7  ;;  %p193_p2 = scmp.ne.s32.totalorder %s2167_s23, %s2163_s22 }
  0x19   : > { %3056 = sst [smem:[#allocation21_spill]] %s2203_s8  ;;  %p194_p3 = scmp.eq.s32.totalorder %s2326_s11, 3 }
  0x1a   : > { %p2336_p4 = por %p84_p1, %p59_p0  ;;  %p199_p5 = scmp.ne.s32.totalorder %s2163_s22, %s2159_s21 }
  0x1b   : > { %p2342_p6 = por %p194_p3, %p193_p2  ;;  %p200_p7 = scmp.eq.s32.totalorder %s1620_s12, 3 }
  0x1c   : > { %s3057_s13 = scalar_select %p2336_p4, 1, 0 }
  0x1d   : > { %s3059_s14 = scalar_select %p2342_p6, 1, 0 }
  0x1e   : > { %3058 = sst [smem:[#allocation22_spill]] %s3057_s13  ;;  %p1621_p8 = scmp.ge.s32.totalorder %s2211_s10, 1 }
  0x1f   : > { %3060 = sst [smem:[#allocation23_spill]] %s3059_s14  ;;  %p207_p9 = scmp.lt.s32.totalorder %s2211_s10, 5 }
  0x20   : > { %p2348_p10 = por %p200_p7, %p199_p5  ;;  %s3064_s2 = sld [smem:[#allocation27_spill]] }
  0x21   : > { %p2352_p11 = pnand %p1621_p8, %p207_p9  ;;  %s2213_s20 = smov [#allocation7]  }
  0x22   : > { %s3061_s15 = scalar_select %p2348_p10, 1, 0 }
  0x23   : > { %p1724_p12 = pneg %p2352_p11  ;;  %s220_s24 = sshll.u32 %s2213_s20, 4  ;;  %s221_s24 = int_to_ptr.vmem [resolvable:$true] %s220_s24 }
  0x24   : > { %3062 = sst [smem:[#allocation24_spill]] %s3061_s15  ;;  %s2215_s15 = smov 16  }
  0x25   : > { %p1725_p13 = pnand %p1724_p12, %p59_p0  ;;  %s3065_s4 = sld [smem:[#allocation29_spill]] }
  0x26   : > { %s218_s19 = sshll.u32 %s3064_s2, 4  ;;  %s2214_s2 = smov 256   ;;  %s219_s19 = int_to_ptr.hbm [resolvable:$true] %s218_s19 }
  0x27   : > { %1727 = dma.hbm_to_vmem [thread:$0]  (!%p1725_p13), %s219_s19, 4096, %s221_s24, [#allocation6], %s2214_s2, %s2214_s2, %s2215_s15  }
  0x28   : > { %s2216_s21 = smov [#allocation8]   ;;  %p52_p1 = scmp.ne.s32.totalorder %s2191_s29, %s2187_s28 }
  0x29   : > { %s237_s20 = sshll.u32 %s2216_s21, 4  ;;  %p53_p2 = scmp.eq.s32.totalorder %s2211_s10, 0  ;;  %s238_s20 = int_to_ptr.vmem [resolvable:$true] %s237_s20 }
  0x2a   : > { %p58_p3 = scmp.ne.s32.totalorder %s2187_s28, %s2183_s27  ;;  %p1744_p5 = scmp.lt.s32.totalorder %s2211_s10, 4 }
  0x2b   : > { %s235_s18 = sshll.u32 %s3065_s4, 4  ;;  %s254_s12 = sand.u32 1, %s2191_s29   ;;  %s236_s18 = int_to_ptr.hbm [resolvable:$true] %s235_s18 }
  0x2c   : > { %1730 = dma.hbm_to_vmem [thread:$0]  (!%p1725_p13), %s236_s18, 8192, %s238_s20, [#allocation9], %s2214_s2, %s2214_s2, %s2215_s15  }
  0x2d   : > { %p54_p7 = por %p53_p2, %p52_p1  ;;  %p2379_p8 = por %p59_p0, %p58_p3 }
  0x2e   : > { %s1625_s2 = sshll.u32 %s254_s12, 7  ;;  %s1659_s21 = sshll.u32 %s2207_s9, 7 }
  0x2f   : > { %s3067_s0 = sld [smem:[#allocation26_spill]]  ;;  %s258_s24 = scalar_lea.vmem [#allocation2], %s1625_s2 }
  0x30   : > { %s266_s18 = sshll.u32 %s258_s24, 4  ;;  %p1732_p9 = pnand %p1744_p5, %p54_p7  ;;  %s267_s18 = int_to_ptr.vmem [resolvable:$true] %s266_s18 }
  0x31   : > { %s255_s6 = scalar_lea.sflag [#allocation3], %s254_s12  ;;  %s3036_s14 = smov 128  }
  0x32   : > { %s3037_s4 = smov 8   ;;  %s71_s2 = sadd.s32 1, %s2179_s26 }
  0x33   : > { %p78_p12 = scmp.ne.s32.totalorder %s2179_s26, %s2175_s25  ;;  %s183_s15 = sadd.s32 1, %s2167_s23 }
  0x34   : > { %s276_s12 = sand.u32 1, %s2211_s10   ;;  %s278_s24 = sand.u32 1, %s2179_s26  }
  0x35   : > { %s263_s27 = scalar_lea.hbm %s3067_s0, %s1659_s21  ;;  %s35_s21 = sadd.s32 1, %s2203_s8 }
  0x36   : > { %s264_s20 = sshll.u32 %s263_s27, 4  ;;  %p36_p13 = scmp.ge.s32.totalorder %s35_s21, 2  ;;  %s265_s20 = int_to_ptr.hbm [resolvable:$true] %s264_s20 }
  0x37   : > { %1734 = dma.hbm_to_vmem [thread:$0]  (!%p1732_p9), %s265_s20, 2048, %s267_s18, %s255_s6, %s3036_s14, %s3036_s14, %s3037_s4  }
  0x38   : > { %p2399_p1 = por %p78_p12, %p53_p2  ;;  %s3103_s21 = smov (%p36_p13, %s35_s21), 0 }
  0x39   : > { %3069 = sst [smem:[#allocation25_spill]] %s3103_s21  ;;  %s3070_s27 = sadd.s32 1, %s2207_s9 }
  0x3a   : > { %s3105_s27 = smov (!%p36_p13, %s3070_s27), %s2207_s9  ;;  %s68_s6 = ssub.s32 %s2203_s8, %s3103_s21 }
  0x3b   : > { %p40_p3 = scmp.ge.s32.totalorder %s3105_s27, 2  ;;  %p69_p7 = scmp.eq.s32.totalorder %s68_s6, 0 }
  0x3c   : > { %s1660_s18 = sshll.u32 %s2203_s8, 7  ;;  %s1628_s4 = sshll.u32 %s278_s24, 7 }
  0x3d   : > { %s3107_s27 = smov (%p40_p3, %s3105_s27), 0  ;;  %s3071_s30 = sadd.s32 1, %s2191_s29 }
  0x3e   : > { %s2416_s20 = scalar_select %p69_p7, %s2179_s26, %s71_s2  }
  0x3f   : > { %s42_s14 = ssub.s32 %s2207_s9, %s3107_s27  ;;  %s285_s8 = scalar_lea.hbm %s3025_s1, %s1660_s18 }
  0x40   : > { %p43_p2 = scmp.eq.s32.totalorder %s42_s14, 0  ;;  %s180_s0 = sor.u32 %s68_s6, %s42_s14 }
  0x41   : > { %p181_p9 = scmp.eq.s32.totalorder %s180_s0, 0  ;;  %s280_s3 = scalar_lea.vmem [#allocation5], %s1628_s4 }
  0x42   : > { %s2423_s7 = scalar_select %p43_p2, %s2191_s29, %s3071_s30  }
  0x43   : > { %s2426_s21 = scalar_select %p181_p9, %s2167_s23, %s183_s15  }
  0x44   : > { %s288_s13 = sshll.u32 %s280_s3, 4  ;;  %s286_s25 = sshll.u32 %s285_s8, 4  ;;  %s289_s13 = int_to_ptr.vmem [resolvable:$true] %s288_s13  ;;  %s287_s25 = int_to_ptr.hbm [resolvable:$true] %s286_s25 }
  0x45   : > { %p1735_p12 = pnand %p1744_p5, %p2399_p1  ;;  %s277_s2 = scalar_lea.sflag [#allocation6], %s276_s12 }
  0x46   : > { %s3072_s14 = smov 8   ;;  %s3073_s0 = smov 128  }
  0x47   : > { %1737 = dma.hbm_to_vmem [thread:$0]  (!%p1735_p12), %s287_s25, 2048, %s289_s13, %s277_s2, %s3073_s0, %s3073_s0, %s3072_s14  }
  0x48   : > { %300 = sbr.rel (%p2352_p11) target bundleno = 1011 (0x3f3), region = 44  ;;  %s302_s5 = sand.u32 (!%p2352_p11), 1, %s2187_s28  }
  0x49   : > { %s1632_s22 = sshll.u32 (!%p2352_p11), %s302_s5, 7  ;;  %s303_s4 = scalar_lea.sflag (!%p2352_p11), [#allocation3], %s302_s5 }
  0x4a   : > { %s2441_s3 = scalar_lea.vmem (!%p2352_p11), [#allocation2], %s1632_s22 }
  0x4d   : > { %2138 = dma.done.wait (%p2379_p8), %s303_s4, 2048  }
  0x4e   : > { %2140 = vsyncadd (%p2379_p8), %s303_s4, 4294965248  ;;  %s3074_s30 = sld [smem:[#allocation18_spill]]  ;;  %s312_s15 = sand.u32 1, %s2326_s11  }
  0x4f   : > { %s313_s16 = scalar_lea.sflag [#allocation6], %s312_s15 }
  0x54   : > { %s314_s25 = sand.u32 1, %s3074_s30  }
  0x55   : > { %s1633_s13 = sshll.u32 %s314_s25, 7 }
  0x56   : > { %s2449_s19 = scalar_lea.vmem [#allocation5], %s1633_s13 }
  0x57   : > { %2142 = dma.done.wait (%p2336_p4), %s313_s16, 2048  }
  0x58   : > { %2144 = vsyncadd (%p2336_p4), %s313_s16, 4294965248 }
  0x59   : > { %2146 = dma.done.wait (%p59_p0), [#allocation6], 4096  }
  0x5a   : > { %2148 = vsyncadd (%p59_p0), [#allocation6], 4294963200 }
  0x5b   : > { %2150 = dma.done.wait (%p59_p0), [#allocation9], 8192  }
  0x5c   : > { %2152 = vsyncadd (%p59_p0), [#allocation9], 4294959104  ;;  %v2463_v0 = vld [vmem:[#allocation7 + $0xf0] sm:$0xff]  ;;  %v2465_v1 = vld [vmem:[#allocation7 + $0xf8] sm:$0xff]  ;;  %s3076_s12 = sld [smem:[#allocation28_spill]] }
  0x5d   : > { %v2467_v2 = vld [vmem:[#allocation7 + $0xe0] sm:$0xff]  ;;  %418 = vmatpush.msra.mxu0 %v2463_v0  ;;  %483 = vmatpush.msra.mxu1 %v2465_v1  ;;  %v2471_v3 = vld [vmem:[#allocation7 + $0xe8] sm:$0xff]  ;;  %v2473_v4 = vld [vmem:[#allocation7 + $0xd0] sm:$0xff]  ;;  %s3077_s18 = sld [smem:[#allocation30_spill]] }
  0x5e   : > { %v2475_v5 = vld [vmem:[#allocation7 + $0xd8] sm:$0xff]  ;;  %1662 = vmatpush.msra.mxu2 %v2463_v0  ;;  %1678 = vmatpush.msra.mxu3 %v2465_v1  ;;  %v2481_v6 = vld [vmem:[#allocation7 + $0xc0] sm:$0xff]  ;;  %v2483_v7 = vld [vmem:[#allocation7 + $0xc8] sm:$0xff]  ;;  %s3078_s2 = sld [smem:[#allocation17_spill]] }
  0x5f   : > { %419 = vmatpush.msra.mxu0 %v2467_v2  ;;  %484 = vmatpush.msra.mxu1 %v2471_v3  ;;  %v2489_v8 = vld [vmem:[#allocation7 + $0xb0] sm:$0xff]  ;;  %v2491_v9 = vld [vmem:[#allocation7 + $0xb8] sm:$0xff]  ;;  %v2497_v10 = vld [vmem:[#allocation7 + $0xa0] sm:$0xff]  ;;  %s3079_s22 = sld [smem:[#allocation20_spill]] }
  0x60   : > { %1663 = vmatpush.msra.mxu2 %v2467_v2  ;;  %1679 = vmatpush.msra.mxu3 %v2471_v3  ;;  %v2499_v11 = vld [vmem:[#allocation7 + $0xa8] sm:$0xff]  ;;  %v2505_v12 = vld [vmem:[#allocation7 + $0x90] sm:$0xff]  ;;  %v2507_v13 = vld [vmem:[#allocation7 + $0x98] sm:$0xff]  ;;  %s3080_s4 = sld [smem:[#allocation19_spill]] }
  0x61   : > { %420 = vmatpush.msra.mxu0 %v2473_v4  ;;  %485 = vmatpush.msra.mxu1 %v2475_v5  ;;  %v2513_v14 = vld [vmem:[#allocation7 + $0x80] sm:$0xff]  ;;  %v2515_v15 = vld [vmem:[#allocation7 + $0x88] sm:$0xff]  ;;  %v2521_v16 = vld [vmem:[#allocation7 + $0x70] sm:$0xff]  ;;  %s3081_s13 = sld [smem:[#allocation31_spill]] }
  0x62   : > { %1664 = vmatpush.msra.mxu2 %v2473_v4  ;;  %1680 = vmatpush.msra.mxu3 %v2475_v5  ;;  %v2523_v17 = vld [vmem:[#allocation7 + $0x78] sm:$0xff]  ;;  %v2529_v18 = vld [vmem:[#allocation7 + $0x60] sm:$0xff]  ;;  %v2531_v19 = vld [vmem:[#allocation7 + $0x68] sm:$0xff] }
  0x63   : > { %421 = vmatpush.msra.mxu0 %v2481_v6  ;;  %486 = vmatpush.msra.mxu1 %v2483_v7  ;;  %v2537_v20 = vld [vmem:[#allocation7 + $0x50] sm:$0xff]  ;;  %v2539_v21 = vld [vmem:[#allocation7 + $0x58] sm:$0xff]  ;;  %v2545_v22 = vld [vmem:[#allocation7 + $0x40] sm:$0xff] }
  0x64   : > { %1665 = vmatpush.msra.mxu2 %v2481_v6  ;;  %1681 = vmatpush.msra.mxu3 %v2483_v7  ;;  %v2547_v23 = vld [vmem:[#allocation7 + $0x48] sm:$0xff]  ;;  %v2553_v24 = vld [vmem:[#allocation7 + $0x30] sm:$0xff]  ;;  %v2555_v25 = vld [vmem:[#allocation7 + $0x38] sm:$0xff]  ;;  %s358_s14 = sand.u32 1, %s3078_s2  }
  0x65   : > { %422 = vmatpush.msra.mxu0 %v2489_v8  ;;  %487 = vmatpush.msra.mxu1 %v2491_v9  ;;  %v384_v26 = vld [vmem:[#allocation7 + $0x20] sm:$0xff]  ;;  %v2561_v27 = vld [vmem:[#allocation7 + $0x28] sm:$0xff]  ;;  %v382_v28 = vld [vmem:[#allocation7 + $0x10] sm:$0xff]  ;;  %s1636_s0 = sshll.u32 %s358_s14, 7 }
  0x66   : > { %1666 = vmatpush.msra.mxu2 %v2489_v8  ;;  %1682 = vmatpush.msra.mxu3 %v2491_v9  ;;  %v2567_v29 = vld [vmem:[#allocation7 + $0x18] sm:$0xff]  ;;  %v380_v30 = vld [vmem:[#allocation7] sm:$0xff]  ;;  %v2572_v31 = vld [vmem:[#allocation7 + $0x8] sm:$0xff]  ;;  %s2936_s5 = scalar_lea.vmem [#allocation10], %s1636_s0 }
  0x67   : > { %423 = vmatpush.msra.mxu0 %v2497_v10  ;;  %488 = vmatpush.msra.mxu1 %v2499_v11  ;;  %v364_v32 = vld [vmem:[%s2441_s3] sm:$0xff]  ;;  %v365_v33 = vld [vmem:[%s2441_s3 + $0x8] sm:$0xff]  ;;  %v366_v34 = vld [vmem:[%s2441_s3 + $0x10] sm:$0xff] }
  0x68   : > { %1667 = vmatpush.msra.mxu2 %v2497_v10  ;;  %1683 = vmatpush.msra.mxu3 %v2499_v11  ;;  %v367_v35 = vld [vmem:[%s2441_s3 + $0x18] sm:$0xff]  ;;  %v368_v36 = vld [vmem:[%s2441_s3 + $0x20] sm:$0xff]  ;;  %v369_v37 = vld [vmem:[%s2441_s3 + $0x28] sm:$0xff] }
  0x69   : > { %424 = vmatpush.msra.mxu0 %v2505_v12  ;;  %489 = vmatpush.msra.mxu1 %v2507_v13  ;;  %v370_v38 = vld [vmem:[%s2441_s3 + $0x30] sm:$0xff]  ;;  %v371_v39 = vld [vmem:[%s2441_s3 + $0x38] sm:$0xff]  ;;  %v376_v40 = vld [vmem:[%s2441_s3 + $0x60] sm:$0xff] }
  0x6a   : > { %1668 = vmatpush.msra.mxu2 %v2505_v12  ;;  %1684 = vmatpush.msra.mxu3 %v2507_v13  ;;  %v372_v41 = vld [vmem:[%s2441_s3 + $0x40] sm:$0xff]  ;;  %v377_v42 = vld [vmem:[%s2441_s3 + $0x68] sm:$0xff]  ;;  %v610_v43 = vld [vmem:[#allocation8 + $0xf0] sm:$0xff] }
  0x6b   : > { %425 = vmatpush.msra.mxu0 %v2513_v14  ;;  %490 = vmatpush.msra.mxu1 %v2515_v15  ;;  %v642_v44 = vld [vmem:[#allocation8 + $0x1f0] sm:$0xff]  ;;  %v608_v45 = vld [vmem:[#allocation8 + $0xe0] sm:$0xff]  ;;  %v373_v49 = vld [vmem:[%s2441_s3 + $0x48] sm:$0xff] }
  0x6c   : > { %1669 = vmatpush.msra.mxu2 %v2513_v14  ;;  %1685 = vmatpush.msra.mxu3 %v2515_v15  ;;  %v640_v46 = vld [vmem:[#allocation8 + $0x1e0] sm:$0xff]  ;;  %v638_v47 = vld [vmem:[#allocation8 + $0x1d0] sm:$0xff]  ;;  %v379_v62 = vld [vmem:[%s2441_s3 + $0x78] sm:$0xff] }
  0x6d   : > { %426 = vmatpush.msra.mxu0 %v2521_v16  ;;  %491 = vmatpush.msra.mxu1 %v2523_v17  ;;  %v606_v48 = vld [vmem:[#allocation8 + $0xd0] sm:$0xff]  ;;  %v604_v50 = vld [vmem:[#allocation8 + $0xc0] sm:$0xff] }
  0x6e   : > { %1670 = vmatpush.msra.mxu2 %v2521_v16  ;;  %1686 = vmatpush.msra.mxu3 %v2523_v17  ;;  %v636_v51 = vld [vmem:[#allocation8 + $0x1c0] sm:$0xff]  ;;  %v378_v52 = vld [vmem:[%s2441_s3 + $0x70] sm:$0xff] }
  0x6f   : > { %427 = vmatpush.msra.mxu0 %v2529_v18  ;;  %492 = vmatpush.msra.mxu1 %v2531_v19  ;;  %v602_v53 = vld [vmem:[#allocation8 + $0xb0] sm:$0xff]  ;;  %v600_v55 = vld [vmem:[#allocation8 + $0xa0] sm:$0xff] }
  0x70   : > { %1671 = vmatpush.msra.mxu2 %v2529_v18  ;;  %1687 = vmatpush.msra.mxu3 %v2531_v19  ;;  %v634_v54 = vld [vmem:[#allocation8 + $0x1b0] sm:$0xff]  ;;  %v632_v56 = vld [vmem:[#allocation8 + $0x1a0] sm:$0xff] }
  0x71   : > { %428 = vmatpush.msra.mxu0 %v2537_v20  ;;  %493 = vmatpush.msra.mxu1 %v2539_v21  ;;  %v598_v57 = vld [vmem:[#allocation8 + $0x90] sm:$0xff]  ;;  %v596_v60 = vld [vmem:[#allocation8 + $0x80] sm:$0xff] }
  0x72   : > { %1672 = vmatpush.msra.mxu2 %v2537_v20  ;;  %1688 = vmatpush.msra.mxu3 %v2539_v21  ;;  %v630_v58 = vld [vmem:[#allocation8 + $0x190] sm:$0xff]  ;;  %v628_v61 = vld [vmem:[#allocation8 + $0x180] sm:$0xff] }
  0x73   : > { %429 = vmatpush.msra.mxu0 %v2545_v22  ;;  %494 = vmatpush.msra.mxu1 %v2547_v23  ;;  %v374_v59 = vld [vmem:[%s2441_s3 + $0x50] sm:$0xff] }
  0x74   : > { %1673 = vmatpush.msra.mxu2 %v2545_v22  ;;  %1689 = vmatpush.msra.mxu3 %v2547_v23  ;;  %v594_v63 = vld [vmem:[#allocation8 + $0x70] sm:$0xff] }
  0x75   : > { %430 = vmatpush.msra.mxu0 %v2553_v24  ;;  %495 = vmatpush.msra.mxu1 %v2555_v25 }
  0x76   : > { %1674 = vmatpush.msra.mxu2 %v2553_v24  ;;  %1690 = vmatpush.msra.mxu3 %v2555_v25 }
  0x77   : > { %431 = vmatpush.msra.mxu0 %v384_v26  ;;  %496 = vmatpush.msra.mxu1 %v2561_v27 }
  0x78   : > { %1675 = vmatpush.msra.mxu2 %v384_v26  ;;  %1691 = vmatpush.msra.mxu3 %v2561_v27 }
  0x79   : > { %432 = vmatpush.msra.mxu0 %v382_v28  ;;  %497 = vmatpush.msra.mxu1 %v2567_v29 }
  0x7a   : > { %1676 = vmatpush.msra.mxu2 %v382_v28  ;;  %1692 = vmatpush.msra.mxu3 %v2567_v29 }
  0x7b   : > { %433 = vmatpush.msra.mxu0 %v380_v30  ;;  %498 = vmatpush.msra.mxu1 %v2572_v31 }
  0x7c   : > { %434 = vmatmul.f32.vlgmr.msra.gmra.mxu0 %v364_v32  ;;  %499 = vmatmul.f32.vlgmr.msra.gmra.mxu1 %v364_v32  ;;  %v2682_v32 = vld [vmem:[%s2449_s19 + $0x20] sm:$0xff] }
  0x7d   : > { %1694 = vmatpush.msrb.mxu1 %v2463_v0  ;;  %796 = vmatpush.msrb.mxu0 %v2463_v0  ;;  %v626_v0 = vld [vmem:[#allocation8 + $0x170] sm:$0xff] }
  0x7e   : > { %1677 = vmatpush.msra.mxu2 %v380_v30  ;;  %1693 = vmatpush.msra.mxu3 %v2572_v31 }
  0x7f   : > { %1695 = vmatpush.msrb.mxu1 %v2467_v2  ;;  %797 = vmatpush.msrb.mxu0 %v2467_v2  ;;  %v624_v2 = vld [vmem:[#allocation8 + $0x160] sm:$0xff] }
  0x80   : > { %470 = vmatmul.f32.vlgmr.msra.gmra.mxu2 %v376_v40  ;;  %535 = vmatmul.f32.vlgmr.msra.gmra.mxu3 %v376_v40 }
  0x81   : > { %1696 = vmatpush.msrb.mxu1 %v2473_v4  ;;  %798 = vmatpush.msrb.mxu0 %v2473_v4  ;;  %v622_v4 = vld [vmem:[#allocation8 + $0x150] sm:$0xff] }
  0x82   : > { %715 = vmatpush.msrb.mxu3 %v642_v44  ;;  %650 = vmatpush.msrb.mxu2 %v610_v43 }
  0x83   : > { %1697 = vmatpush.msrb.mxu1 %v2481_v6  ;;  %799 = vmatpush.msrb.mxu0 %v2481_v6  ;;  %v588_v6 = vld [vmem:[#allocation8 + $0x40] sm:$0xff] }
  0x84   : > { %437 = vmatmul.f32.gmra.mxu0 %v365_v33  ;;  %502 = vmatmul.f32.gmra.mxu1 %v365_v33 }
  0x85   : > { %1698 = vmatpush.msrb.mxu1 %v2489_v8  ;;  %800 = vmatpush.msrb.mxu0 %v2489_v8  ;;  %v586_v8 = vld [vmem:[#allocation8 + $0x30] sm:$0xff] }
  0x86   : > { %716 = vmatpush.msrb.mxu3 %v640_v46  ;;  %651 = vmatpush.msrb.mxu2 %v608_v45  ;;  %v609_v45 = vld [vmem:[#allocation8 + $0xe8] sm:$0xff] }
  0x87   : > { %1699 = vmatpush.msrb.mxu1 %v2497_v10  ;;  %801 = vmatpush.msrb.mxu0 %v2497_v10  ;;  %v584_v10 = vld [vmem:[#allocation8 + $0x20] sm:$0xff]  ;;  %v641_v46 = vld [vmem:[#allocation8 + $0x1e8] sm:$0xff] }
  0x88   : > { %473 = vmatmul.f32.gmra.mxu2 %v377_v42  ;;  %538 = vmatmul.f32.gmra.mxu3 %v377_v42  ;;  %v2692_v42 = vld [vmem:[%s2449_s19 + $0x28] sm:$0xff] }
  0x89   : > { %1700 = vmatpush.msrb.mxu1 %v2505_v12  ;;  %802 = vmatpush.msrb.mxu0 %v2505_v12  ;;  %v2638_v12 = vld [vmem:[%s2449_s19 + $0x40] sm:$0xff] }
  0x8a   : > { %717 = vmatpush.msrb.mxu3 %v638_v47  ;;  %652 = vmatpush.msrb.mxu2 %v606_v48 }
  0x8b   : > { %1701 = vmatpush.msrb.mxu1 %v2513_v14  ;;  %803 = vmatpush.msrb.mxu0 %v2513_v14  ;;  %v614_v14 = vld [vmem:[#allocation8 + $0x110] sm:$0xff] }
  0x8c   : > { %440 = vmatmul.f32.gmra.mxu0 %v366_v34  ;;  %505 = vmatmul.f32.gmra.mxu1 %v366_v34 }
  0x8d   : > { %1702 = vmatpush.msrb.mxu1 %v2521_v16  ;;  %804 = vmatpush.msrb.mxu0 %v2521_v16  ;;  %v580_v16 = vld [vmem:[#allocation8] sm:$0xff] }
  0x8e   : > { %653 = vmatpush.msrb.mxu2 %v604_v50  ;;  %718 = vmatpush.msrb.mxu3 %v636_v51 }
  0x8f   : > { %1703 = vmatpush.msrb.mxu1 %v2529_v18  ;;  %805 = vmatpush.msrb.mxu0 %v2529_v18  ;;  %v2646_v18 = vld [vmem:[%s2449_s19 + $0x48] sm:$0xff] }
  0x90   : > { %476 = vmatmul.f32.gmra.mxu2 %v378_v52  ;;  %541 = vmatmul.f32.gmra.mxu3 %v378_v52  ;;  %v2702_v52 = vld [vmem:[%s2449_s19 + $0x30] sm:$0xff] }
  0x91   : > { %1704 = vmatpush.msrb.mxu1 %v2537_v20  ;;  %806 = vmatpush.msrb.mxu0 %v2537_v20  ;;  %v2654_v20 = vld [vmem:[%s2449_s19 + $0x50] sm:$0xff] }
  0x92   : > { %654 = vmatpush.msrb.mxu2 %v602_v53  ;;  %719 = vmatpush.msrb.mxu3 %v634_v54 }
  0x93   : > { %1705 = vmatpush.msrb.mxu1 %v2545_v22  ;;  %807 = vmatpush.msrb.mxu0 %v2545_v22  ;;  %v2662_v22 = vld [vmem:[%s2449_s19 + $0x58] sm:$0xff] }
  0x94   : > { %443 = vmatmul.f32.gmra.mxu0 %v367_v35  ;;  %508 = vmatmul.f32.gmra.mxu1 %v367_v35  ;;  %v611_v35 = vld [vmem:[#allocation8 + $0xf8] sm:$0xff] }
  0x95   : > { %1706 = vmatpush.msrb.mxu1 %v2553_v24  ;;  %808 = vmatpush.msrb.mxu0 %v2553_v24  ;;  %v412_v24 = vld [vmem:[%s3076_s12] sm:$0x3]  ;;  %s1474_s12 = scalar_lea.sflag [#allocation4], %s358_s14 }
  0x96   : > { %655 = vmatpush.msrb.mxu2 %v600_v55  ;;  %720 = vmatpush.msrb.mxu3 %v632_v56  ;;  %v607_v55 = vld [vmem:[#allocation8 + $0xd8] sm:$0xff] }
  0x97   : > { %1707 = vmatpush.msrb.mxu1 %v384_v26  ;;  %809 = vmatpush.msrb.mxu0 %v384_v26  ;;  %v2674_v26 = vperm.slane %v412_v24, 1  ;;  %v639_v56 = vld [vmem:[#allocation8 + $0x1d8] sm:$0xff] }
  0x98   : > { %656 = vmatpush.msrb.mxu2 %v598_v57  ;;  %721 = vmatpush.msrb.mxu3 %v630_v58 }
  0x99   : > { %1708 = vmatpush.msrb.mxu1 %v382_v28  ;;  %810 = vmatpush.msrb.mxu0 %v382_v28 }
  0x9a   : > { %657 = vmatpush.msrb.mxu2 %v596_v60  ;;  %722 = vmatpush.msrb.mxu3 %v628_v61 }
  0x9b   : > { %1709 = vmatpush.msrb.mxu1 %v380_v30  ;;  %811 = vmatpush.msrb.mxu0 %v380_v30 }
  0x9c   : > { %446 = vmatmul.f32.gmra.mxu0 %v368_v36  ;;  %511 = vmatmul.f32.gmra.mxu1 %v368_v36  ;;  %v643_v36 = vld [vmem:[#allocation8 + $0x1f8] sm:$0xff] }
  0x9d   : > { %861 = vmatpush.msra.mxu1 %v2465_v1  ;;  %479 = vmatmul.f32.gmra.mxu2 %v379_v62  ;;  %v592_v1 = vld [vmem:[#allocation8 + $0x60] sm:$0xff] }
  0x9e   : > { %544 = vmatmul.f32.gmra.mxu3 %v379_v62  ;;  %658 = vmatpush.msrb.mxu2 %v594_v63  ;;  %v2712_v62 = vld [vmem:[%s2449_s19 + $0x38] sm:$0xff] }
  0x9f   : > { %862 = vmatpush.msra.mxu1 %v2471_v3  ;;  %723 = vmatpush.msrb.mxu3 %v626_v0  ;;  %v590_v3 = vld [vmem:[#allocation8 + $0x50] sm:$0xff] }
  0xa0   : > { %659 = vmatpush.msrb.mxu2 %v592_v1  ;;  %v605_v1 = vld [vmem:[#allocation8 + $0xc8] sm:$0xff] }
  0xa1   : > { %863 = vmatpush.msra.mxu1 %v2475_v5  ;;  %v375_v5 = vld [vmem:[%s2441_s3 + $0x58] sm:$0xff]  ;;  %724 = vmatpush.msrb.mxu3 %v624_v2  ;;  %v637_v2 = vld [vmem:[#allocation8 + $0x1c8] sm:$0xff]  ;;  %s1661_s3 = sshll.u32 %s3079_s22, 5  ;;  %s2073_s22 = scalar_lea.hbm %s3081_s13, 512 }
  0xa2   : > { %660 = vmatpush.msrb.mxu2 %v590_v3  ;;  %s1485_s30 = sadd.s32 %s3080_s4, %s1661_s3 }
  0xa3   : > { %864 = vmatpush.msra.mxu1 %v2483_v7  ;;  %725 = vmatpush.msrb.mxu3 %v622_v4  ;;  %v620_v7 = vld [vmem:[#allocation8 + $0x140] sm:$0xff]  ;;  %s1656_s8 = sshll.u32 %s1485_s30, 3 }
  0xa4   : > { %449 = vmatmul.f32.gmra.mxu0 %v369_v37  ;;  %514 = vmatmul.f32.gmra.mxu1 %v369_v37  ;;  %s1487_s16 = scalar_lea.hbm %s3081_s13, %s1656_s8 }
  0xa5   : > { %865 = vmatpush.msra.mxu1 %v2491_v9  ;;  %661 = vmatpush.msrb.mxu2 %v588_v6  ;;  %v618_v9 = vld [vmem:[#allocation8 + $0x130] sm:$0xff]  ;;  %s1490_s11 = sshll.u32 %s1487_s16, 4  ;;  %s1491_s11 = int_to_ptr.hbm [resolvable:$true] %s1490_s11 }
  0xa6   : > { %726 = vmatpush.msrb.mxu3 %v620_v7  ;;  %s2067_s6 = sshra.s32 %s1491_s11, 4  ;;  %s2068_s6 = int_to_ptr.hbm [resolvable:$true] %s2067_s6 }
  0xa7   : > { %866 = vmatpush.msra.mxu1 %v2499_v11  ;;  %662 = vmatpush.msrb.mxu2 %v586_v8  ;;  %v616_v11 = vld [vmem:[#allocation8 + $0x120] sm:$0xff]  ;;  %s2069_s24 = scalar_lea.hbm %s2068_s6, 128  ;;  %p2074_p5 = scmp.lt.s32.totalorder %s2068_s6, %s3081_s13 }
  0xa8   : > { %727 = vmatpush.msrb.mxu3 %v618_v9  ;;  %v603_v9 = vld [vmem:[#allocation8 + $0xb8] sm:$0xff]  ;;  %p2070_p0 = scmp.ne.s32.totalorder %s2068_s6, %s2069_s24  ;;  %p2075_p8 = scmp.lt.s32.totalorder %s2073_s22, %s2069_s24 }
  0xa9   : > { %867 = vmatpush.msra.mxu1 %v2507_v13  ;;  %663 = vmatpush.msrb.mxu2 %v584_v10  ;;  %v582_v13 = vld [vmem:[#allocation8 + $0x10] sm:$0xff]  ;;  %v635_v10 = vld [vmem:[#allocation8 + $0x1b8] sm:$0xff] }
  0xaa   : > { %728 = vmatpush.msrb.mxu3 %v616_v11  ;;  %p2071_p4 = pnand %p2070_p0, %p2342_p6  ;;  %p2076_p13 = por %p2075_p8, %p2074_p5 }
  0xab   : > { %868 = vmatpush.msra.mxu1 %v2515_v15  ;;  %664 = vmatpush.msrb.mxu2 %v582_v13  ;;  %v2641_v15 = vld [vmem:[%s2449_s19] sm:$0xff] }
  0xac   : > { %452 = vmatmul.f32.gmra.mxu0 %v370_v38  ;;  %517 = vmatmul.f32.gmra.mxu1 %v370_v38  ;;  %p2072_p11 = pneg %p2071_p4 }
  0xad   : > { %869 = vmatpush.msra.mxu1 %v2523_v17  ;;  %729 = vmatpush.msrb.mxu3 %v614_v14  ;;  %v612_v17 = vld [vmem:[#allocation8 + $0x100] sm:$0xff] }
  0xae   : > { %665 = vmatpush.msrb.mxu2 %v580_v16  ;;  %p2077_p1 = pnand %p2076_p13, %p2072_p11 }
  0xaf   : > { %870 = vmatpush.msra.mxu1 %v2531_v19  ;;  %730 = vmatpush.msrb.mxu3 %v612_v17  ;;  %v2649_v19 = vld [vmem:[%s2449_s19 + $0x8] sm:$0xff] }
  0xb0   : > { %958 = vmatpush.msra.mxu2 %v611_v35 }
  0xb1   : > { %871 = vmatpush.msra.mxu1 %v2539_v21  ;;  %v2657_v21 = vld [vmem:[%s2449_s19 + $0x10] sm:$0xff]  ;;  %1023 = vmatpush.msra.mxu3 %v643_v36  ;;  %v599_v36 = vld [vmem:[#allocation8 + $0x98] sm:$0xff] }
  0xb2   : > { %959 = vmatpush.msra.mxu2 %v609_v45  ;;  %v597_v45 = vld [vmem:[#allocation8 + $0x88] sm:$0xff] }
  0xb3   : > { %872 = vmatpush.msra.mxu1 %v2547_v23  ;;  %v2665_v23 = vld [vmem:[%s2449_s19 + $0x18] sm:$0xff]  ;;  %1024 = vmatpush.msra.mxu3 %v641_v46 }
  0xb4   : > { %455 = vmatmul.f32.gmra.mxu0 %v371_v39  ;;  %520 = vmatmul.f32.gmra.mxu1 %v371_v39  ;;  %v2687_v39 = vld [vmem:[%s2449_s19 + $0x68] sm:$0xff] }
  0xb5   : > { %873 = vmatpush.msra.mxu1 %v2555_v25  ;;  %v2672_v25 = vperm.slane %v412_v24, 0  ;;  %960 = vmatpush.msra.mxu2 %v607_v55 }
  0xb6   : > { %1025 = vmatpush.msra.mxu3 %v639_v56 }
  0xb7   : > { %874 = vmatpush.msra.mxu1 %v2561_v27  ;;  %961 = vmatpush.msra.mxu2 %v605_v1 }
  0xb8   : > { %1026 = vmatpush.msra.mxu3 %v637_v2 }
  0xb9   : > { %875 = vmatpush.msra.mxu1 %v2567_v29  ;;  %v2677_v29 = vld [vmem:[%s2449_s19 + $0x60] sm:$0xff]  ;;  %962 = vmatpush.msra.mxu2 %v603_v9 }
  0xba   : > { %1027 = vmatpush.msra.mxu3 %v635_v10 }
  0xbb   : > { %876 = vmatpush.msra.mxu1 %v2572_v31 }
  0xbc   : > { %458 = vmatmul.f32.gmra.mxu0 %v372_v41  ;;  %523 = vmatmul.f32.gmra.mxu1 %v372_v41 }
  0xc4   : > { %461 = vmatmul.f32.gmra.mxu0 %v373_v49  ;;  %526 = vmatmul.f32.gmra.mxu1 %v373_v49  ;;  %v2697_v49 = vld [vmem:[%s2449_s19 + $0x70] sm:$0xff] }
  0xcc   : > { %464 = vmatmul.f32.gmra.mxu0 %v374_v59  ;;  %529 = vmatmul.f32.gmra.mxu1 %v374_v59  ;;  %v2707_v59 = vld [vmem:[%s2449_s19 + $0x78] sm:$0xff]  ;;  %s1488_s19 = sshll.u32 %s2936_s5, 4  ;;  %s1489_s19 = int_to_ptr.vmem [resolvable:$true] %s1488_s19 }
  0xd4   : > { %467 = vmatmul.f32.gmra.mxu0 %v375_v5  ;;  %532 = vmatmul.f32.gmra.mxu1 %v375_v5 }
  0xdc   : > { %836 = vmatmul.f32.vlgmr.msrb.gmra.mxu1 %v2638_v12  ;;  %812 = vmatmul.f32.vlgmr.msrb.gmra.mxu0 %v2641_v15 }
  0xe4   : > { %839 = vmatmul.f32.gmra.mxu1 %v2646_v18  ;;  %815 = vmatmul.f32.gmra.mxu0 %v2649_v19 }
  0xec   : > { %842 = vmatmul.f32.gmra.mxu1 %v2654_v20  ;;  %818 = vmatmul.f32.gmra.mxu0 %v2657_v21 }
  0xf4   : > { %845 = vmatmul.f32.gmra.mxu1 %v2662_v22  ;;  %821 = vmatmul.f32.gmra.mxu0 %v2665_v23 }
  0xf9   : > { %v435_v27 = vpop.f32.mrf.mxu0  ;;  %v500_v28 = vpop.f32.mrf.mxu1 }
  0xfa   : > { %v436_v30 = vadd.f32 %v435_v27, %v2672_v25  ;;  %v501_v31 = vadd.f32 %v500_v28, %v2674_v26  ;;  %v601_v27 = vld [vmem:[#allocation8 + $0xa8] sm:$0xff] }
  0xfb   : > { %963 = vmatpush.msra.mxu2 %v601_v27  ;;  %v621_v27 = vld [vmem:[#allocation8 + $0x148] sm:$0xff] }
  0xfc   : > { %v548_v33 = vmax.f32 %v436_v30, 0.0  ;;  %v549_v34 = vmax.f32 %v501_v31, 0.0  ;;  %848 = vmatmul.f32.gmra.mxu1 %v2677_v29  ;;  %824 = vmatmul.f32.gmra.mxu0 %v2682_v32 }
  0xfd   : > { %964 = vmatpush.msra.mxu2 %v599_v36 }
  0xfe   : > { %666 = vmatmul.f32.vlgmr.msrb.gmra.mxu2 %v548_v33  ;;  %731 = vmatmul.f32.vlgmr.msrb.gmra.mxu3 %v549_v34 }
  0xff   : > { %965 = vmatpush.msra.mxu2 %v597_v45 }
 0x101   : > { %v438_v37 = vpop.f32.mrf.mxu0  ;;  %v503_v38 = vpop.f32.mrf.mxu1 }
 0x102   : > { %v439_v40 = vadd.f32 %v438_v37, %v2672_v25  ;;  %v504_v41 = vadd.f32 %v503_v38, %v2674_v26 }
 0x104   : > { %851 = vmatmul.f32.gmra.mxu1 %v2687_v39  ;;  %v550_v43 = vmax.f32 %v439_v40, 0.0  ;;  %v551_v44 = vmax.f32 %v504_v41, 0.0  ;;  %827 = vmatmul.f32.gmra.mxu0 %v2692_v42 }
 0x106   : > { %669 = vmatmul.f32.gmra.mxu2 %v550_v43  ;;  %734 = vmatmul.f32.gmra.mxu3 %v551_v44 }
 0x109   : > { %v441_v47 = vpop.f32.mrf.mxu0  ;;  %v506_v48 = vpop.f32.mrf.mxu1 }
 0x10a   : > { %v442_v50 = vadd.f32 %v441_v47, %v2672_v25  ;;  %v507_v51 = vadd.f32 %v506_v48, %v2674_v26 }
 0x10c   : > { %854 = vmatmul.f32.gmra.mxu1 %v2697_v49  ;;  %v552_v53 = vmax.f32 %v442_v50, 0.0  ;;  %v553_v54 = vmax.f32 %v507_v51, 0.0  ;;  %830 = vmatmul.f32.gmra.mxu0 %v2702_v52 }
 0x10e   : > { %672 = vmatmul.f32.gmra.mxu2 %v552_v53  ;;  %737 = vmatmul.f32.gmra.mxu3 %v553_v54  ;;  %v595_v54 = vld [vmem:[#allocation8 + $0x78] sm:$0xff] }
 0x10f   : > { %966 = vmatpush.msra.mxu2 %v595_v54 }
 0x111   : > { %v444_v57 = vpop.f32.mrf.mxu0  ;;  %v509_v58 = vpop.f32.mrf.mxu1 }
 0x112   : > { %v445_v60 = vadd.f32 %v444_v57, %v2672_v25  ;;  %v510_v61 = vadd.f32 %v509_v58, %v2674_v26 }
 0x114   : > { %857 = vmatmul.f32.gmra.mxu1 %v2707_v59  ;;  %v554_v63 = vmax.f32 %v445_v60, 0.0  ;;  %v555_v0 = vmax.f32 %v510_v61, 0.0  ;;  %833 = vmatmul.f32.gmra.mxu0 %v2712_v62 }
 0x116   : > { %675 = vmatmul.f32.gmra.mxu2 %v554_v63  ;;  %740 = vmatmul.f32.gmra.mxu3 %v555_v0  ;;  %v593_v63 = vld [vmem:[#allocation8 + $0x68] sm:$0xff] }
 0x117   : > { %967 = vmatpush.msra.mxu2 %v593_v63 }
 0x119   : > { %v447_v3 = vpop.f32.mrf.mxu0  ;;  %v512_v4 = vpop.f32.mrf.mxu1 }
 0x11a   : > { %v448_v5 = vadd.f32 %v447_v3, %v2672_v25  ;;  %v513_v6 = vadd.f32 %v512_v4, %v2674_v26 }
 0x11c   : > { %877 = vmatmul.f32.vlgmr.msra.gmra.mxu1 %v2641_v15  ;;  %v556_v7 = vmax.f32 %v448_v5, 0.0  ;;  %v557_v8 = vmax.f32 %v513_v6, 0.0  ;;  %v633_v15 = vld [vmem:[#allocation8 + $0x1a8] sm:$0xff]  ;;  %v591_v6 = vld [vmem:[#allocation8 + $0x58] sm:$0xff] }
 0x11d   : > { %1028 = vmatpush.msra.mxu3 %v633_v15  ;;  %968 = vmatpush.msra.mxu2 %v591_v6 }
 0x11e   : > { %678 = vmatmul.f32.gmra.mxu2 %v556_v7  ;;  %743 = vmatmul.f32.gmra.mxu3 %v557_v8  ;;  %v623_v7 = vld [vmem:[#allocation8 + $0x158] sm:$0xff] }
 0x121   : > { %v450_v11 = vpop.f32.mrf.mxu0  ;;  %v515_v13 = vpop.f32.mrf.mxu1 }
 0x122   : > { %v451_v14 = vadd.f32 %v450_v11, %v2672_v25  ;;  %v516_v16 = vadd.f32 %v515_v13, %v2674_v26  ;;  %v536_v13 = vpop.f32.mrf.mxu3 }
 0x124   : > { %880 = vmatmul.f32.gmra.mxu1 %v2649_v19  ;;  %v558_v17 = vmax.f32 %v451_v14, 0.0  ;;  %v559_v24 = vmax.f32 %v516_v16, 0.0  ;;  %v631_v19 = vld [vmem:[#allocation8 + $0x198] sm:$0xff]  ;;  %v589_v16 = vld [vmem:[#allocation8 + $0x48] sm:$0xff] }
 0x125   : > { %1029 = vmatpush.msra.mxu3 %v631_v19  ;;  %969 = vmatpush.msra.mxu2 %v589_v16 }
 0x126   : > { %681 = vmatmul.f32.gmra.mxu2 %v558_v17  ;;  %746 = vmatmul.f32.gmra.mxu3 %v559_v24  ;;  %v587_v24 = vld [vmem:[#allocation8 + $0x38] sm:$0xff] }
 0x127   : > { %970 = vmatpush.msra.mxu2 %v587_v24 }
 0x129   : > { %v453_v28 = vpop.f32.mrf.mxu0  ;;  %v518_v30 = vpop.f32.mrf.mxu1 }
 0x12a   : > { %v454_v31 = vadd.f32 %v453_v28, %v2672_v25  ;;  %v519_v33 = vadd.f32 %v518_v30, %v2674_v26  ;;  %v537_v28 = vadd.f32 %v536_v13, %v2674_v26  ;;  %v585_v30 = vld [vmem:[#allocation8 + $0x28] sm:$0xff] }
 0x12b   : > { %971 = vmatpush.msra.mxu2 %v585_v30 }
 0x12c   : > { %883 = vmatmul.f32.gmra.mxu1 %v2657_v21  ;;  %v560_v34 = vmax.f32 %v454_v31, 0.0  ;;  %v561_v35 = vmax.f32 %v519_v33, 0.0  ;;  %v629_v21 = vld [vmem:[#allocation8 + $0x188] sm:$0xff]  ;;  %v583_v33 = vld [vmem:[#allocation8 + $0x18] sm:$0xff]  ;;  %v573_v36 = vmax.f32 %v537_v28, 0.0 }
 0x12d   : > { %1030 = vmatpush.msra.mxu3 %v629_v21  ;;  %972 = vmatpush.msra.mxu2 %v583_v33 }
 0x12e   : > { %684 = vmatmul.f32.gmra.mxu2 %v560_v34  ;;  %749 = vmatmul.f32.gmra.mxu3 %v561_v35  ;;  %v539_v34 = vpop.f32.mrf.mxu3  ;;  %v581_v35 = vld [vmem:[#allocation8 + $0x8] sm:$0xff] }
 0x12f   : > { %973 = vmatpush.msra.mxu2 %v581_v35 }
 0x131   : > { %v456_v37 = vpop.f32.mrf.mxu0  ;;  %v521_v38 = vpop.f32.mrf.mxu1 }
 0x132   : > { %v457_v40 = vadd.f32 %v456_v37, %v2672_v25  ;;  %v522_v41 = vadd.f32 %v521_v38, %v2674_v26  ;;  %v619_v37 = vld [vmem:[#allocation8 + $0x138] sm:$0xff] }
 0x134   : > { %886 = vmatmul.f32.gmra.mxu1 %v2665_v23  ;;  %v562_v43 = vmax.f32 %v457_v40, 0.0  ;;  %v563_v44 = vmax.f32 %v522_v41, 0.0  ;;  %v627_v23 = vld [vmem:[#allocation8 + $0x178] sm:$0xff]  ;;  %v540_v41 = vadd.f32 %v539_v34, %v2674_v26 }
 0x135   : > { %1031 = vmatpush.msra.mxu3 %v627_v23  ;;  %v615_v23 = vld [vmem:[#allocation8 + $0x118] sm:$0xff] }
 0x136   : > { %687 = vmatmul.f32.gmra.mxu2 %v562_v43  ;;  %752 = vmatmul.f32.gmra.mxu3 %v563_v44  ;;  %v542_v21 = vpop.f32.mrf.mxu3 }
 0x139   : > { %v459_v46 = vpop.f32.mrf.mxu0  ;;  %v524_v47 = vpop.f32.mrf.mxu1 }
 0x13a   : > { %v460_v48 = vadd.f32 %v459_v46, %v2672_v25  ;;  %v525_v50 = vadd.f32 %v524_v47, %v2674_v26  ;;  %v617_v46 = vld [vmem:[#allocation8 + $0x128] sm:$0xff] }
 0x13c   : > { %889 = vmatmul.f32.gmra.mxu1 %v2682_v32  ;;  %v564_v51 = vmax.f32 %v460_v48, 0.0  ;;  %v565_v53 = vmax.f32 %v525_v50, 0.0  ;;  %v625_v32 = vld [vmem:[#allocation8 + $0x168] sm:$0xff]  ;;  %v543_v48 = vadd.f32 %v542_v21, %v2674_v26 }
 0x13d   : > { %1032 = vmatpush.msra.mxu3 %v625_v32 }
 0x13e   : > { %690 = vmatmul.f32.gmra.mxu2 %v564_v51  ;;  %755 = vmatmul.f32.gmra.mxu3 %v565_v53  ;;  %v577_v53 = vmax.f32 %v543_v48, 0.0 }
 0x13f   : > { %1033 = vmatpush.msra.mxu3 %v623_v7 }
 0x141   : > { %v462_v55 = vpop.f32.mrf.mxu0  ;;  %v527_v56 = vpop.f32.mrf.mxu1  ;;  %1034 = vmatpush.msra.mxu3 %v621_v27 }
 0x142   : > { %v463_v57 = vadd.f32 %v462_v55, %v2672_v25  ;;  %v528_v58 = vadd.f32 %v527_v56, %v2674_v26  ;;  %v545_v55 = vpop.f32.mrf.mxu3 }
 0x143   : > { %1035 = vmatpush.msra.mxu3 %v619_v37 }
 0x144   : > { %892 = vmatmul.f32.gmra.mxu1 %v2692_v42  ;;  %v566_v60 = vmax.f32 %v463_v57, 0.0  ;;  %v567_v61 = vmax.f32 %v528_v58, 0.0  ;;  %v471_v42 = vpop.f32.mrf.mxu2  ;;  %v546_v57 = vadd.f32 %v545_v55, %v2674_v26 }
 0x145   : > { %v472_v17 = vadd.f32 %v471_v42, %v2672_v25  ;;  %1036 = vmatpush.msra.mxu3 %v617_v46 }
 0x146   : > { %693 = vmatmul.f32.gmra.mxu2 %v566_v60  ;;  %758 = vmatmul.f32.gmra.mxu3 %v567_v61  ;;  %v579_v60 = vmax.f32 %v546_v57, 0.0  ;;  %v613_v61 = vld [vmem:[#allocation8 + $0x108] sm:$0xff] }
 0x147   : > { %1037 = vmatpush.msra.mxu3 %v615_v23 }
 0x149   : > { %v465_v0 = vpop.f32.mrf.mxu0  ;;  %v530_v1 = vpop.f32.mrf.mxu1  ;;  %1038 = vmatpush.msra.mxu3 %v613_v61  ;;  %v2822_v61 = vld [vmem:[%s3077_s18] sm:$0x3] }
 0x14a   : > { %v466_v2 = vadd.f32 %v465_v0, %v2672_v25  ;;  %v531_v3 = vadd.f32 %v530_v1, %v2674_v26 }
 0x14c   : > { %895 = vmatmul.f32.gmra.mxu1 %v2702_v52  ;;  %v568_v4 = vmax.f32 %v466_v2, 0.0  ;;  %v569_v5 = vmax.f32 %v531_v3, 0.0  ;;  %v474_v15 = vpop.f32.mrf.mxu2 }
 0x14d   : > { %v475_v19 = vadd.f32 %v474_v15, %v2672_v25 }
 0x14e   : > { %696 = vmatmul.f32.gmra.mxu2 %v568_v4  ;;  %761 = vmatmul.f32.gmra.mxu3 %v569_v5 }
 0x14f   : > { %v574_v43 = vmax.f32 %v475_v19, 0.0 }
 0x151   : > { %v468_v8 = vpop.f32.mrf.mxu0  ;;  %v533_v9 = vpop.f32.mrf.mxu1 }
 0x152   : > { %v469_v10 = vadd.f32 %v468_v8, %v2672_v25  ;;  %v534_v11 = vadd.f32 %v533_v9, %v2674_v26 }
 0x154   : > { %898 = vmatmul.f32.gmra.mxu1 %v2712_v62  ;;  %v570_v14 = vmax.f32 %v469_v10, 0.0  ;;  %v571_v52 = vmax.f32 %v534_v11, 0.0  ;;  %v572_v62 = vmax.f32 %v472_v17, 0.0  ;;  %v477_v40 = vpop.f32.mrf.mxu2 }
 0x155   : > { %v478_v45 = vadd.f32 %v477_v40, %v2672_v25 }
 0x156   : > { %699 = vmatmul.f32.gmra.mxu2 %v570_v14  ;;  %764 = vmatmul.f32.gmra.mxu3 %v571_v52 }
 0x157   : > { %v576_v50 = vmax.f32 %v478_v45, 0.0 }
 0x159   : > { %v2742_v31 = vpop.f32.mrf.mxu1  ;;  %v813_v44 = vpop.f32.mrf.mxu0 }
 0x15a   : > { %v838_v23 = vadd.f32 %v2742_v31, %v2672_v25  ;;  %v2827_v31 = vperm.slane %v2822_v61, 0 }
 0x15c   : > { %901 = vmatmul.f32.gmra.mxu1 %v2638_v12  ;;  %v575_v12 = vmax.f32 %v540_v41, 0.0  ;;  %v480_v51 = vpop.f32.mrf.mxu2 }
 0x15e   : > { %702 = vmatmul.f32.gmra.mxu2 %v572_v62  ;;  %767 = vmatmul.f32.gmra.mxu3 %v573_v36 }
 0x161   : > { %v2746_v38 = vpop.f32.mrf.mxu1  ;;  %v816_v54 = vpop.f32.mrf.mxu0 }
 0x162   : > { %v817_v1 = vadd.f32 %v816_v54, %v2672_v25 }
 0x164   : > { %904 = vmatmul.f32.gmra.mxu1 %v2646_v18  ;;  %v481_v18 = vadd.f32 %v480_v51, %v2672_v25 }
 0x166   : > { %705 = vmatmul.f32.gmra.mxu2 %v574_v43  ;;  %770 = vmatmul.f32.gmra.mxu3 %v575_v12  ;;  %v578_v58 = vmax.f32 %v481_v18, 0.0 }
 0x169   : > { %v2751_v47 = vpop.f32.mrf.mxu1  ;;  %v819_v63 = vpop.f32.mrf.mxu0 }
 0x16a   : > { %v820_v6 = vadd.f32 %v819_v63, %v2672_v25 }
 0x16c   : > { %907 = vmatmul.f32.gmra.mxu1 %v2654_v20  ;;  %v814_v20 = vadd.f32 %v813_v44, %v2672_v25 }
 0x16e   : > { %708 = vmatmul.f32.gmra.mxu2 %v576_v50  ;;  %773 = vmatmul.f32.gmra.mxu3 %v577_v53  ;;  %v926_v0 = vmax.f32 %v814_v20, 0.0  ;;  %v942_v20 = vmax.f32 %v838_v23, 0.0 }
 0x171   : > { %v2756_v56 = vpop.f32.mrf.mxu1  ;;  %v822_v5 = vpop.f32.mrf.mxu0 }
 0x172   : > { %v823_v10 = vadd.f32 %v822_v5, %v2672_v25 }
 0x174   : > { %910 = vmatmul.f32.gmra.mxu1 %v2662_v22  ;;  %v928_v22 = vmax.f32 %v817_v1, 0.0 }
 0x176   : > { %711 = vmatmul.f32.gmra.mxu2 %v578_v58  ;;  %776 = vmatmul.f32.gmra.mxu3 %v579_v60 }
 0x179   : > { %v2761_v32 = vpop.f32.mrf.mxu1  ;;  %v825_v9 = vpop.f32.mrf.mxu0 }
 0x17a   : > { %v826_v52 = vadd.f32 %v825_v9, %v2672_v25 }
 0x17c   : > { %913 = vmatmul.f32.gmra.mxu1 %v2677_v29  ;;  %v930_v29 = vmax.f32 %v820_v6, 0.0  ;;  %v934_v24 = vmax.f32 %v826_v52, 0.0  ;;  %v844_v52 = vadd.f32 %v2751_v47, %v2672_v25 }
 0x17e   : > { %974 = vmatmul.f32.vlgmr.msra.gmra.mxu2 %v926_v0  ;;  %v841_v0 = vadd.f32 %v2746_v38, %v2672_v25 }
 0x180   : > { %v944_v9 = vmax.f32 %v841_v0, 0.0 }
 0x181   : > { %v2765_v2 = vpop.f32.mrf.mxu2  ;;  %v2767_v3 = vpop.f32.mrf.mxu3 }
 0x182   : > { %v2769_v4 = vpop.f32.mrf.mxu1  ;;  %v828_v16 = vpop.f32.mrf.mxu0 }
 0x183   : > { %v829_v30 = vadd.f32 %v828_v16, %v2672_v25 }
 0x184   : > { %916 = vmatmul.f32.gmra.mxu1 %v2687_v39  ;;  %v932_v39 = vmax.f32 %v823_v10, 0.0 }
 0x185   : > { %v936_v34 = vmax.f32 %v829_v30, 0.0 }
 0x186   : > { %977 = vmatmul.f32.gmra.mxu2 %v928_v22 }
 0x189   : > { %v2773_v42 = vpop.f32.mrf.mxu2  ;;  %v2775_v7 = vpop.f32.mrf.mxu3 }
 0x18a   : > { %v2777_v8 = vpop.f32.mrf.mxu1  ;;  %v831_v62 = vpop.f32.mrf.mxu0 }
 0x18b   : > { %v832_v37 = vadd.f32 %v831_v62, %v2672_v25 }
 0x18c   : > { %919 = vmatmul.f32.gmra.mxu1 %v2697_v49 }
 0x18d   : > { %v938_v43 = vmax.f32 %v832_v37, 0.0 }
 0x18e   : > { %980 = vmatmul.f32.gmra.mxu2 %v930_v29 }
 0x191   : > { %v2781_v11 = vpop.f32.mrf.mxu2  ;;  %v2783_v13 = vpop.f32.mrf.mxu3 }
 0x192   : > { %v2785_v14 = vpop.f32.mrf.mxu1  ;;  %v834_v45 = vpop.f32.mrf.mxu0 }
 0x193   : > { %v835_v46 = vadd.f32 %v834_v45, %v2672_v25  ;;  %v850_v45 = vadd.f32 %v2761_v32, %v2672_v25 }
 0x194   : > { %922 = vmatmul.f32.gmra.mxu1 %v2707_v59 }
 0x195   : > { %v940_v51 = vmax.f32 %v835_v46, 0.0 }
 0x196   : > { %983 = vmatmul.f32.gmra.mxu2 %v932_v39 }
 0x199   : > { %v2789_v17 = vpop.f32.mrf.mxu2  ;;  %v2791_v49 = vpop.f32.mrf.mxu3 }
 0x19a   : > { %v878_v27 = vpop.f32.mrf.mxu1 }
 0x19b   : > { %v879_v15 = vadd.f32 %v878_v27, %v2674_v26 }
 0x19d   : > { %v927_v28 = vmax.f32 %v879_v15, 0.0 }
 0x19e   : > { %986 = vmatmul.f32.gmra.mxu2 %v934_v24 }
 0x19f   : > { %1039 = vmatmul.f32.vlgmr.msra.gmra.mxu3 %v927_v28  ;;  %v946_v28 = vmax.f32 %v844_v52, 0.0 }
 0x1a1   : > { %v2795_v33 = vpop.f32.mrf.mxu2  ;;  %v2797_v59 = vpop.f32.mrf.mxu3 }
 0x1a2   : > { %v881_v35 = vpop.f32.mrf.mxu1 }
 0x1a3   : > { %v882_v36 = vadd.f32 %v881_v35, %v2674_v26 }
 0x1a5   : > { %v929_v19 = vmax.f32 %v882_v36, 0.0 }
 0x1a6   : > { %989 = vmatmul.f32.gmra.mxu2 %v936_v34  ;;  %v847_v34 = vadd.f32 %v2756_v56, %v2672_v25 }
 0x1a7   : > { %1042 = vmatmul.f32.gmra.mxu3 %v929_v19 }
 0x1a9   : > { %v2801_v40 = vpop.f32.mrf.mxu2  ;;  %v2803_v41 = vpop.f32.mrf.mxu3 }
 0x1aa   : > { %v884_v44 = vpop.f32.mrf.mxu1 }
 0x1ab   : > { %v885_v12 = vadd.f32 %v884_v44, %v2674_v26 }
 0x1ad   : > { %v931_v21 = vmax.f32 %v885_v12, 0.0 }
 0x1ae   : > { %992 = vmatmul.f32.gmra.mxu2 %v938_v43  ;;  %v948_v43 = vmax.f32 %v847_v34, 0.0 }
 0x1af   : > { %1045 = vmatmul.f32.gmra.mxu3 %v931_v21 }
 0x1b1   : > { %v2807_v48 = vpop.f32.mrf.mxu2  ;;  %v2809_v50 = vpop.f32.mrf.mxu3 }
 0x1b2   : > { %v887_v53 = vpop.f32.mrf.mxu1 }
 0x1b3   : > { %v888_v18 = vadd.f32 %v887_v53, %v2674_v26 }
 0x1b5   : > { %v933_v54 = vmax.f32 %v888_v18, 0.0  ;;  %v950_v18 = vmax.f32 %v850_v45, 0.0 }
 0x1b6   : > { %995 = vmatmul.f32.gmra.mxu2 %v940_v51 }
 0x1b7   : > { %1048 = vmatmul.f32.gmra.mxu3 %v933_v54 }
 0x1b9   : > { %v2814_v55 = vpop.f32.mrf.mxu2  ;;  %v2816_v57 = vpop.f32.mrf.mxu3 }
 0x1ba   : > { %v890_v58 = vpop.f32.mrf.mxu1 }
 0x1bb   : > { %v891_v60 = vadd.f32 %v890_v58, %v2674_v26  ;;  %v853_v58 = vadd.f32 %v2769_v4, %v2672_v25 }
 0x1bd   : > { %v935_v63 = vmax.f32 %v891_v60, 0.0 }
 0x1be   : > { %998 = vmatmul.f32.gmra.mxu2 %v942_v20 }
 0x1bf   : > { %1051 = vmatmul.f32.gmra.mxu3 %v935_v63 }
 0x1c1   : > { %v691_v1 = vpop.f32.mrf.mxu2  ;;  %v756_v22 = vpop.f32.mrf.mxu3 }
 0x1c2   : > { %v692_v5 = vadd.f32 %v691_v1, %v2827_v31  ;;  %v893_v6 = vpop.f32.mrf.mxu1  ;;  %v952_v1 = vmax.f32 %v853_v58, 0.0 }
 0x1c3   : > { %v894_v29 = vadd.f32 %v893_v6, %v2674_v26  ;;  %v856_v6 = vadd.f32 %v2777_v8, %v2672_v25 }
 0x1c4   : > { %v2831_v10 = vadd.f32 %v756_v22, %v692_v5 }
 0x1c5   : > { %v937_v39 = vmax.f32 %v894_v29, 0.0 }
 0x1c6   : > { %1001 = vmatmul.f32.gmra.mxu2 %v944_v9 }
 0x1c7   : > { %1054 = vmatmul.f32.gmra.mxu3 %v937_v39 }
 0x1c9   : > { %v694_v38 = vpop.f32.mrf.mxu2  ;;  %v759_v16 = vpop.f32.mrf.mxu3 }
 0x1ca   : > { %v695_v24 = vadd.f32 %v694_v38, %v2827_v31  ;;  %v896_v27 = vpop.f32.mrf.mxu1  ;;  %v954_v38 = vmax.f32 %v856_v6, 0.0 }
 0x1cb   : > { %v897_v15 = vadd.f32 %v896_v27, %v2674_v26  ;;  %v859_v27 = vadd.f32 %v2785_v14, %v2672_v25 }
 0x1cc   : > { %v2837_v30 = vadd.f32 %v759_v16, %v695_v24 }
 0x1cd   : > { %v939_v62 = vmax.f32 %v897_v15, 0.0 }
 0x1ce   : > { %1004 = vmatmul.f32.gmra.mxu2 %v946_v28 }
 0x1cf   : > { %1057 = vmatmul.f32.gmra.mxu3 %v939_v62 }
 0x1d1   : > { %v697_v35 = vpop.f32.mrf.mxu2  ;;  %v762_v36 = vpop.f32.mrf.mxu3 }
 0x1d2   : > { %v698_v47 = vadd.f32 %v697_v35, %v2827_v31  ;;  %v899_v19 = vpop.f32.mrf.mxu1  ;;  %v956_v35 = vmax.f32 %v859_v27, 0.0 }
 0x1d3   : > { %v900_v37 = vadd.f32 %v899_v19, %v2674_v26 }
 0x1d4   : > { %v2843_v44 = vadd.f32 %v762_v36, %v698_v47 }
 0x1d5   : > { %v941_v12 = vmax.f32 %v900_v37, 0.0 }
 0x1d6   : > { %1007 = vmatmul.f32.gmra.mxu2 %v948_v43 }
 0x1d7   : > { %1060 = vmatmul.f32.gmra.mxu3 %v941_v12 }
 0x1d9   : > { %v700_v21 = vpop.f32.mrf.mxu2  ;;  %v765_v46 = vpop.f32.mrf.mxu3 }
 0x1da   : > { %v701_v56 = vadd.f32 %v700_v21, %v2827_v31  ;;  %v902_v51 = vpop.f32.mrf.mxu1 }
 0x1db   : > { %v903_v53 = vadd.f32 %v902_v51, %v2674_v26 }
 0x1dc   : > { %v2849_v54 = vadd.f32 %v765_v46, %v701_v56 }
 0x1dd   : > { %v943_v23 = vmax.f32 %v903_v53, 0.0 }
 0x1de   : > { %1010 = vmatmul.f32.gmra.mxu2 %v950_v18 }
 0x1df   : > { %1063 = vmatmul.f32.gmra.mxu3 %v943_v23 }
 0x1e1   : > { %v703_v60 = vpop.f32.mrf.mxu2  ;;  %v768_v20 = vpop.f32.mrf.mxu3 }
 0x1e2   : > { %v704_v32 = vadd.f32 %v703_v60, %v2827_v31  ;;  %v905_v63 = vpop.f32.mrf.mxu1 }
 0x1e3   : > { %v906_v0 = vadd.f32 %v905_v63, %v2674_v26 }
 0x1e4   : > { %v2855_v22 = vadd.f32 %v768_v20, %v704_v32 }
 0x1e5   : > { %v945_v5 = vmax.f32 %v906_v0, 0.0  ;;  %v2877_v0 = vperm.slane %v2822_v61, 1 }
 0x1e6   : > { %1013 = vmatmul.f32.gmra.mxu2 %v952_v1 }
 0x1e7   : > { %1066 = vmatmul.f32.gmra.mxu3 %v945_v5 }
 0x1e9   : > { %v706_v29 = vpop.f32.mrf.mxu2  ;;  %v771_v39 = vpop.f32.mrf.mxu3 }
 0x1ea   : > { %v707_v9 = vadd.f32 %v706_v29, %v2827_v31  ;;  %v908_v4 = vpop.f32.mrf.mxu1 }
 0x1eb   : > { %v909_v52 = vadd.f32 %v908_v4, %v2674_v26 }
 0x1ec   : > { %v2861_v16 = vadd.f32 %v771_v39, %v707_v9 }
 0x1ed   : > { %v947_v24 = vmax.f32 %v909_v52, 0.0 }
 0x1ee   : > { %1016 = vmatmul.f32.gmra.mxu2 %v954_v38 }
 0x1ef   : > { %1069 = vmatmul.f32.gmra.mxu3 %v947_v24 }
 0x1f1   : > { %v709_v15 = vpop.f32.mrf.mxu2  ;;  %v774_v62 = vpop.f32.mrf.mxu3 }
 0x1f2   : > { %v710_v28 = vadd.f32 %v709_v15, %v2827_v31  ;;  %v911_v8 = vpop.f32.mrf.mxu1 }
 0x1f3   : > { %v912_v34 = vadd.f32 %v911_v8, %v2674_v26 }
 0x1f4   : > { %v2867_v36 = vadd.f32 %v774_v62, %v710_v28 }
 0x1f5   : > { %v949_v47 = vmax.f32 %v912_v34, 0.0 }
 0x1f6   : > { %1019 = vmatmul.f32.gmra.mxu2 %v956_v35 }
 0x1f7   : > { %1072 = vmatmul.f32.gmra.mxu3 %v949_v47 }
 0x1f9   : > { %v712_v19 = vpop.f32.mrf.mxu2  ;;  %v777_v12 = vpop.f32.mrf.mxu3 }
 0x1fa   : > { %v713_v37 = vadd.f32 %v712_v19, %v2827_v31  ;;  %v914_v43 = vpop.f32.mrf.mxu1 }
 0x1fb   : > { %v915_v25 = vadd.f32 %v914_v43, %v2674_v26 }
 0x1fc   : > { %v2871_v14 = vadd.f32 %v777_v12, %v713_v37 }
 0x1fd   : > { %v951_v45 = vmax.f32 %v915_v25, 0.0 }
 0x1ff   : > { %1075 = vmatmul.f32.gmra.mxu3 %v951_v45 }
 0x201   : > { %v975_v21 = vpop.f32.mrf.mxu2 }
 0x202   : > { %v917_v46 = vpop.f32.mrf.mxu1  ;;  %v976_v5 = vadd.f32 %v975_v21, %v2877_v0 }
 0x203   : > { %v918_v56 = vadd.f32 %v917_v46, %v2674_v26 }
 0x205   : > { %v953_v51 = vmax.f32 %v918_v56, 0.0 }
 0x207   : > { %1078 = vmatmul.f32.gmra.mxu3 %v953_v51 }
 0x209   : > { %v978_v18 = vpop.f32.mrf.mxu2 }
 0x20a   : > { %v920_v53 = vpop.f32.mrf.mxu1  ;;  %v979_v9 = vadd.f32 %v978_v18, %v2877_v0 }
 0x20b   : > { %v921_v23 = vadd.f32 %v920_v53, %v2674_v26 }
 0x20d   : > { %v955_v58 = vmax.f32 %v921_v23, 0.0 }
 0x20f   : > { %1081 = vmatmul.f32.gmra.mxu3 %v955_v58 }
 0x211   : > { %v981_v32 = vpop.f32.mrf.mxu2 }
 0x212   : > { %v923_v60 = vpop.f32.mrf.mxu1 }
 0x213   : > { %v924_v20 = vadd.f32 %v923_v60, %v2674_v26  ;;  %v982_v26 = vadd.f32 %v981_v32, %v2877_v0 }
 0x215   : > { %v957_v63 = vmax.f32 %v924_v20, 0.0 }
 0x217   : > { %1084 = vmatmul.f32.gmra.mxu3 %v957_v63 }
 0x219   : > { %v984_v1 = vpop.f32.mrf.mxu2 }
 0x21a   : > { %v985_v61 = vadd.f32 %v984_v1, %v2877_v0 }
 0x221   : > { %v987_v4 = vpop.f32.mrf.mxu2 }
 0x222   : > { %v1040_v6 = vpop.f32.mrf.mxu3  ;;  %v988_v62 = vadd.f32 %v987_v4, %v2877_v0 }
 0x223   : > { %v2880_v29 = vadd.f32 %v1040_v6, %v976_v5 }
 0x229   : > { %v990_v38 = vpop.f32.mrf.mxu2 }
 0x22a   : > { %v1043_v39 = vpop.f32.mrf.mxu3  ;;  %v991_v19 = vadd.f32 %v990_v38, %v2877_v0 }
 0x22b   : > { %v2883_v52 = vadd.f32 %v1043_v39, %v979_v9 }
 0x231   : > { %v993_v8 = vpop.f32.mrf.mxu2 }
 0x232   : > { %v1046_v24 = vpop.f32.mrf.mxu3  ;;  %v994_v12 = vadd.f32 %v993_v8, %v2877_v0 }
 0x233   : > { %v1047_v27 = vadd.f32 %v1046_v24, %v982_v26 }
 0x239   : > { %v996_v47 = vpop.f32.mrf.mxu2 }
 0x23a   : > { %v1049_v15 = vpop.f32.mrf.mxu3  ;;  %v997_v46 = vadd.f32 %v996_v47, %v2877_v0 }
 0x23b   : > { %v1050_v28 = vadd.f32 %v1049_v15, %v985_v61 }
 0x241   : > { %v999_v25 = vpop.f32.mrf.mxu2 }
 0x242   : > { %v1052_v34 = vpop.f32.mrf.mxu3  ;;  %v1000_v18 = vadd.f32 %v999_v25, %v2877_v0 }
 0x243   : > { %v1053_v35 = vadd.f32 %v1052_v34, %v988_v62 }
 0x249   : > { %v1002_v56 = vpop.f32.mrf.mxu2 }
 0x24a   : > { %v1055_v37 = vpop.f32.mrf.mxu3  ;;  %v1003_v20 = vadd.f32 %v1002_v56, %v2877_v0 }
 0x24b   : > { %v1056_v43 = vadd.f32 %v1055_v37, %v991_v19 }
 0x251   : > { %v1005_v60 = vpop.f32.mrf.mxu2 }
 0x252   : > { %v1058_v45 = vpop.f32.mrf.mxu3  ;;  %v1006_v56 = vadd.f32 %v1005_v60, %v2877_v0 }
 0x253   : > { %v1059_v21 = vadd.f32 %v1058_v45, %v994_v12 }
 0x259   : > { %v1008_v1 = vpop.f32.mrf.mxu2 }
 0x25a   : > { %v1061_v51 = vpop.f32.mrf.mxu3  ;;  %v1009_v45 = vadd.f32 %v1008_v1, %v2877_v0 }
 0x25b   : > { %v1062_v53 = vadd.f32 %v1061_v51, %v997_v46 }
 0x261   : > { %v1011_v6 = vpop.f32.mrf.mxu2 }
 0x262   : > { %v1064_v23 = vpop.f32.mrf.mxu3  ;;  %v1012_v12 = vadd.f32 %v1011_v6, %v2877_v0 }
 0x263   : > { %v1065_v58 = vadd.f32 %v1064_v23, %v1000_v18  ;;  %v668_v18 = vadd.f32 %v2765_v2, %v2827_v31  ;;  %v671_v23 = vadd.f32 %v2773_v42, %v2827_v31  ;;  %v677_v2 = vadd.f32 %v2789_v17, %v2827_v31 }
 0x269   : > { %v1014_v4 = vpop.f32.mrf.mxu2 }
 0x26a   : > { %v1067_v32 = vpop.f32.mrf.mxu3  ;;  %v1015_v19 = vadd.f32 %v1014_v4, %v2877_v0 }
 0x26b   : > { %v1068_v63 = vadd.f32 %v1067_v32, %v1003_v20 }
 0x271   : > { %v1017_v38 = vpop.f32.mrf.mxu2 }
 0x272   : > { %v1070_v5 = vpop.f32.mrf.mxu3  ;;  %v1018_v34 = vadd.f32 %v1017_v38, %v2877_v0 }
 0x273   : > { %v1071_v51 = vadd.f32 %v1070_v5, %v1006_v56 }
 0x279   : > { %v1020_v61 = vpop.f32.mrf.mxu2 }
 0x27a   : > { %v1073_v9 = vpop.f32.mrf.mxu3  ;;  %v1021_v15 = vadd.f32 %v1020_v61, %v2877_v0  ;;  %v733_v0 = vadd.f32 %v2767_v3, %v668_v18  ;;  %v680_v3 = vadd.f32 %v2795_v33, %v2827_v31 }
 0x27b   : > { %v1074_v46 = vadd.f32 %v1073_v9, %v1009_v45 }
 0x27c   : > { %v745_v42 = vadd.f32 %v2797_v59, %v680_v3 }
 0x282   : > { %v1076_v39 = vpop.f32.mrf.mxu3 }
 0x283   : > { %v1077_v25 = vadd.f32 %v1076_v39, %v1012_v12 }
 0x28a   : > { %v1079_v26 = vpop.f32.mrf.mxu3 }
 0x28b   : > { %v1080_v37 = vadd.f32 %v1079_v26, %v1015_v19 }
 0x292   : > { %v1082_v24 = vpop.f32.mrf.mxu3 }
 0x293   : > { %v1083_v47 = vadd.f32 %v1082_v24, %v1018_v34 }
 0x29a   : > { %v1085_v8 = vpop.f32.mrf.mxu3 }
 0x29b   : > { %v1086_v62 = vadd.f32 %v1085_v8, %v1021_v15 }
 0x29d   : > { %1088 = vmatpush.xpose.msra.mxu0 %v1086_v62 }
 0x2a1   : > { %1089 = vmatpush.xpose.msra.mxu0 %v1083_v47 }
 0x2a5   : > { %1090 = vmatpush.xpose.msra.mxu0 %v1080_v37 }
 0x2a9   : > { %1091 = vmatpush.xpose.msra.mxu0 %v1077_v25 }
 0x2ad   : > { %1092 = vmatpush.xpose.msra.mxu0 %v1074_v46 }
 0x2b1   : > { %1093 = vmatpush.xpose.msra.mxu0 %v1071_v51 }
 0x2b5   : > { %1094 = vmatpush.xpose.msra.mxu0 %v1068_v63 }
 0x2b9   : > { %1095 = vmatpush.xpose.msra.mxu0 %v1065_v58 }
 0x2bd   : > { %1096 = vmatpush.xpose.msra.mxu0 %v1062_v53  ;;  %v736_v53 = vadd.f32 %v2775_v7, %v671_v23  ;;  %v683_v7 = vadd.f32 %v2801_v40, %v2827_v31 }
 0x2c1   : > { %1097 = vmatpush.xpose.msra.mxu0 %v1059_v21 }
 0x2c5   : > { %1098 = vmatpush.xpose.msra.mxu0 %v1056_v43 }
 0x2c9   : > { %1099 = vmatpush.xpose.msra.mxu0 %v1053_v35 }
 0x2cd   : > { %1100 = vmatpush.xpose.msra.mxu0 %v1050_v28  ;;  %v674_v28 = vadd.f32 %v2781_v11, %v2827_v31  ;;  %v748_v11 = vadd.f32 %v2803_v41, %v683_v7 }
 0x2d1   : > { %1101 = vmatpush.xpose.msra.mxu0 %v1047_v27  ;;  %v739_v27 = vadd.f32 %v2783_v13, %v674_v28  ;;  %v686_v13 = vadd.f32 %v2807_v48, %v2827_v31 }
 0x2d3   : > { %v751_v17 = vadd.f32 %v2809_v50, %v686_v13 }
 0x2d5   : > { %1102 = vmatpush.xpose.msra.mxu0 %v2883_v52 }
 0x2d9   : > { %1103 = vmatpush.xpose.msra.mxu0 %v2880_v29  ;;  %v742_v29 = vadd.f32 %v2791_v49, %v677_v2  ;;  %v689_v49 = vadd.f32 %v2814_v55, %v2827_v31 }
 0x2db   : > { %v754_v33 = vadd.f32 %v2816_v57, %v689_v49 }
 0x2dc   : > { %1104 = vmatmul.f32.vlgmr.msra.gmra.mxu0 %v733_v0 }
 0x2e4   : > { %1107 = vmatmul.f32.gmra.mxu0 %v736_v53 }
 0x2ec   : > { %1110 = vmatmul.f32.gmra.mxu0 %v739_v27 }
 0x2f4   : > { %1113 = vmatmul.f32.gmra.mxu0 %v742_v29 }
 0x2fc   : > { %1116 = vmatmul.f32.gmra.mxu0 %v745_v42 }
 0x304   : > { %1119 = vmatmul.f32.gmra.mxu0 %v748_v11 }
 0x30c   : > { %1122 = vmatmul.f32.gmra.mxu0 %v751_v17 }
 0x314   : > { %1125 = vmatmul.f32.gmra.mxu0 %v754_v33 }
 0x31c   : > { %1128 = vmatmul.f32.gmra.mxu0 %v2831_v10 }
 0x324   : > { %1131 = vmatmul.f32.gmra.mxu0 %v2837_v30 }
 0x32c   : > { %1134 = vmatmul.f32.gmra.mxu0 %v2843_v44 }
 0x334   : > { %1137 = vmatmul.f32.gmra.mxu0 %v2849_v54 }
 0x33c   : > { %1140 = vmatmul.f32.gmra.mxu0 %v2855_v22 }
 0x344   : > { %1143 = vmatmul.f32.gmra.mxu0 %v2861_v16 }
 0x34c   : > { %1146 = vmatmul.f32.gmra.mxu0 %v2867_v36 }
 0x354   : > { %1149 = vmatmul.f32.gmra.mxu0 %v2871_v14 }
 0x359   : > { %v1105_v59 = vpop.f32.mrf.mxu0 }
 0x35a   : > { %v1637_v40 = vmul.f32 -1.442695, %v1105_v59 }
 0x35c   : > { %1869 = vpow2.f32 %v1637_v40 }
 0x361   : > { %v1108_v41 = vpop.f32.mrf.mxu0 }
 0x362   : > { %v1870_v48 = vpop.eup %1869  ;;  %v1638_v50 = vmul.f32 -1.442695, %v1108_v41 }
 0x363   : > { %v1201_v55 = vadd.f32 1.0, %v1870_v48 }
 0x364   : > { %1871 = vpow2.f32 %v1638_v50 }
 0x365   : > { %1873 = vrcp.f32 %v1201_v55  ;;  %v1228_v16 = vand.u32 2147483648, %v1201_v55  ;;  %v1226_v14 = vand.u32 2147483647, %v1201_v55  ;;  %vm1222_vm1 = vweird.f32 %v1201_v55 }
 0x367   : > { %v1229_v60 = vor.u32 1.1754944e-38, %v1228_v16  ;;  %vm1227_vm3 = vcmp.eq.f32.partialorder %v1226_v14, 8.507059e+37 }
 0x369   : > { %v1111_v57 = vpop.f32.mrf.mxu0 }
 0x36a   : > { %v1872_v31 = vpop.eup %1871  ;;  %v1639_v10 = vmul.f32 -1.442695, %v1111_v57 }
 0x36b   : > { %v1874_v30 = vpop.eup %1873  ;;  %v1202_v44 = vadd.f32 1.0, %v1872_v31 }
 0x36c   : > { %v1218_v54 = vmul.f32 %v1874_v30, %v1201_v55  ;;  %1875 = vpow2.f32 %v1639_v10  ;;  %vm1223_vm0 = vweird.f32 %v1874_v30 }
 0x36d   : > { %1877 = vrcp.f32 %v1202_v44  ;;  %vm1224_vm2 = vmor %vm1222_vm1, %vm1223_vm0  ;;  %v1243_v6 = vand.u32 2147483648, %v1202_v44  ;;  %v1241_v4 = vand.u32 2147483647, %v1202_v44  ;;  %vm1237_vm5 = vweird.f32 %v1202_v44 }
 0x36e   : > { %v1219_v22 = vsub.f32 1.0, %v1218_v54 }
 0x36f   : > { %v1244_v15 = vor.u32 1.1754944e-38, %v1243_v6  ;;  %vm1242_vm7 = vcmp.eq.f32.partialorder %v1241_v4, 8.507059e+37 }
 0x370   : > { %v1220_v36 = vmul.f32 %v1874_v30, %v1219_v22 }
 0x371   : > { %v1114_v52 = vpop.f32.mrf.mxu0 }
 0x372   : > { %v1876_v35 = vpop.eup %1875  ;;  %v1221_v43 = vadd.f32 %v1874_v30, %v1220_v36  ;;  %v1640_v21 = vmul.f32 -1.442695, %v1114_v52 }
 0x373   : > { %v1878_v58 = vpop.eup %1877  ;;  %v1203_v20 = vadd.f32 1.0, %v1876_v35 }
 0x374   : > { %v1225_v32 = vsel %vm1224_vm2, %v1874_v30, %v1221_v43  ;;  %v1233_v63 = vmul.f32 %v1878_v58, %v1202_v44  ;;  %1879 = vpow2.f32 %v1640_v21  ;;  %vm1238_vm4 = vweird.f32 %v1878_v58 }
 0x375   : > { %v1230_v1 = vsel %vm1227_vm3, %v1229_v60, %v1225_v32  ;;  %1881 = vrcp.f32 %v1203_v20  ;;  %vm1239_vm6 = vmor %vm1237_vm5, %vm1238_vm4  ;;  %v1258_v37 = vand.u32 2147483648, %v1203_v20  ;;  %v1256_v25 = vand.u32 2147483647, %v1203_v20 }
 0x376   : > { %1457 = vst [vmem:[%s2936_s5] sm:$0xff] %v1230_v1  ;;  %v1234_v5 = vsub.f32 1.0, %v1233_v63  ;;  %vm1252_vm9 = vweird.f32 %v1203_v20 }
 0x377   : > { %v1259_v0 = vor.u32 1.1754944e-38, %v1258_v37  ;;  %vm1257_vm11 = vcmp.eq.f32.partialorder %v1256_v25, 8.507059e+37 }
 0x378   : > { %v1235_v9 = vmul.f32 %v1878_v58, %v1234_v5 }
 0x379   : > { %v1117_v39 = vpop.f32.mrf.mxu0 }
 0x37a   : > { %v1880_v26 = vpop.eup %1879  ;;  %v1236_v38 = vadd.f32 %v1878_v58, %v1235_v9  ;;  %v1641_v24 = vmul.f32 -1.442695, %v1117_v39 }
 0x37b   : > { %v1882_v61 = vpop.eup %1881  ;;  %v1204_v8 = vadd.f32 1.0, %v1880_v26 }
 0x37c   : > { %v1240_v62 = vsel %vm1239_vm6, %v1878_v58, %v1236_v38  ;;  %v1248_v34 = vmul.f32 %v1882_v61, %v1203_v20  ;;  %1883 = vpow2.f32 %v1641_v24  ;;  %vm1253_vm8 = vweird.f32 %v1882_v61 }
 0x37d   : > { %v1245_v47 = vsel %vm1242_vm7, %v1244_v15, %v1240_v62  ;;  %1885 = vrcp.f32 %v1204_v8  ;;  %vm1254_vm10 = vmor %vm1252_vm9, %vm1253_vm8  ;;  %v1273_v29 = vand.u32 2147483648, %v1204_v8  ;;  %v1271_v42 = vand.u32 2147483647, %v1204_v8 }
 0x37e   : > { %1458 = vst [vmem:[%s2936_s5 + $0x8] sm:$0xff] %v1245_v47  ;;  %v1249_v19 = vsub.f32 1.0, %v1248_v34  ;;  %vm1267_vm13 = vweird.f32 %v1204_v8 }
 0x37f   : > { %v1274_v33 = vor.u32 1.1754944e-38, %v1273_v29  ;;  %vm1272_vm15 = vcmp.eq.f32.partialorder %v1271_v42, 8.507059e+37 }
 0x380   : > { %v1250_v12 = vmul.f32 %v1882_v61, %v1249_v19 }
 0x381   : > { %v1120_v45 = vpop.f32.mrf.mxu0 }
 0x382   : > { %v1884_v46 = vpop.eup %1883  ;;  %v1251_v56 = vadd.f32 %v1882_v61, %v1250_v12  ;;  %v1642_v51 = vmul.f32 -1.442695, %v1120_v45 }
 0x383   : > { %v1886_v18 = vpop.eup %1885  ;;  %v1205_v23 = vadd.f32 1.0, %v1884_v46 }
 0x384   : > { %v1255_v53 = vsel %vm1254_vm10, %v1882_v61, %v1251_v56  ;;  %v1263_v28 = vmul.f32 %v1886_v18, %v1204_v8  ;;  %1887 = vpow2.f32 %v1642_v51  ;;  %vm1268_vm12 = vweird.f32 %v1886_v18 }
 0x385   : > { %v1260_v27 = vsel %vm1257_vm11, %v1259_v0, %v1255_v53  ;;  %1889 = vrcp.f32 %v1205_v23  ;;  %vm1269_vm14 = vmor %vm1267_vm13, %vm1268_vm12  ;;  %v1288_v55 = vand.u32 2147483648, %v1205_v23  ;;  %v1286_v31 = vand.u32 2147483647, %v1205_v23 }
 0x386   : > { %1459 = vst [vmem:[%s2936_s5 + $0x10] sm:$0xff] %v1260_v27  ;;  %v1264_v2 = vsub.f32 1.0, %v1263_v28  ;;  %vm1282_vm1 = vweird.f32 %v1205_v23 }
 0x387   : > { %v1289_v16 = vor.u32 1.1754944e-38, %v1288_v55  ;;  %vm1287_vm3 = vcmp.eq.f32.partialorder %v1286_v31, 8.507059e+37 }
 0x388   : > { %v1265_v3 = vmul.f32 %v1886_v18, %v1264_v2 }
 0x389   : > { %v1123_v7 = vpop.f32.mrf.mxu0 }
 0x38a   : > { %v1888_v11 = vpop.eup %1887  ;;  %v1266_v13 = vadd.f32 %v1886_v18, %v1265_v3  ;;  %v1643_v17 = vmul.f32 -1.442695, %v1123_v7 }
 0x38b   : > { %v1890_v49 = vpop.eup %1889  ;;  %v1206_v59 = vadd.f32 1.0, %v1888_v11 }
 0x38c   : > { %v1270_v40 = vsel %vm1269_vm14, %v1886_v18, %v1266_v13  ;;  %v1278_v41 = vmul.f32 %v1890_v49, %v1205_v23  ;;  %1891 = vpow2.f32 %v1643_v17  ;;  %vm1283_vm0 = vweird.f32 %v1890_v49 }
 0x38d   : > { %v1275_v48 = vsel %vm1272_vm15, %v1274_v33, %v1270_v40  ;;  %1893 = vrcp.f32 %v1206_v59  ;;  %vm1284_vm2 = vmor %vm1282_vm1, %vm1283_vm0  ;;  %v1303_v21 = vand.u32 2147483648, %v1206_v59  ;;  %v1301_v60 = vand.u32 2147483647, %v1206_v59 }
 0x38e   : > { %1460 = vst [vmem:[%s2936_s5 + $0x18] sm:$0xff] %v1275_v48  ;;  %v1279_v50 = vsub.f32 1.0, %v1278_v41  ;;  %vm1297_vm5 = vweird.f32 %v1206_v59 }
 0x38f   : > { %v1304_v6 = vor.u32 1.1754944e-38, %v1303_v21  ;;  %vm1302_vm7 = vcmp.eq.f32.partialorder %v1301_v60, 8.507059e+37 }
 0x390   : > { %v1280_v57 = vmul.f32 %v1890_v49, %v1279_v50 }
 0x391   : > { %v1126_v10 = vpop.f32.mrf.mxu0 }
 0x392   : > { %v1892_v30 = vpop.eup %1891  ;;  %v1281_v44 = vadd.f32 %v1890_v49, %v1280_v57  ;;  %v1644_v54 = vmul.f32 -1.442695, %v1126_v10 }
 0x393   : > { %v1894_v22 = vpop.eup %1893  ;;  %v1207_v36 = vadd.f32 1.0, %v1892_v30 }
 0x394   : > { %v1285_v14 = vsel %vm1284_vm2, %v1890_v49, %v1281_v44  ;;  %v1293_v52 = vmul.f32 %v1894_v22, %v1206_v59  ;;  %1895 = vpow2.f32 %v1644_v54  ;;  %vm1298_vm4 = vweird.f32 %v1894_v22 }
 0x395   : > { %v1290_v35 = vsel %vm1287_vm3, %v1289_v16, %v1285_v14  ;;  %1897 = vrcp.f32 %v1207_v36  ;;  %vm1299_vm6 = vmor %vm1297_vm5, %vm1298_vm4  ;;  %v1318_v24 = vand.u32 2147483648, %v1207_v36  ;;  %v1316_v15 = vand.u32 2147483647, %v1207_v36 }
 0x396   : > { %1461 = vst [vmem:[%s2936_s5 + $0x20] sm:$0xff] %v1290_v35  ;;  %v1294_v43 = vsub.f32 1.0, %v1293_v52  ;;  %vm1312_vm9 = vweird.f32 %v1207_v36 }
 0x397   : > { %v1319_v37 = vor.u32 1.1754944e-38, %v1318_v24  ;;  %vm1317_vm11 = vcmp.eq.f32.partialorder %v1316_v15, 8.507059e+37 }
 0x398   : > { %v1295_v58 = vmul.f32 %v1894_v22, %v1294_v43 }
 0x399   : > { %v1129_v20 = vpop.f32.mrf.mxu0 }
 0x39a   : > { %v1896_v32 = vpop.eup %1895  ;;  %v1296_v63 = vadd.f32 %v1894_v22, %v1295_v58  ;;  %v1645_v1 = vmul.f32 -1.442695, %v1129_v20 }
 0x39b   : > { %v1898_v5 = vpop.eup %1897  ;;  %v1208_v9 = vadd.f32 1.0, %v1896_v32 }
 0x39c   : > { %v1300_v4 = vsel %vm1299_vm6, %v1894_v22, %v1296_v63  ;;  %v1308_v39 = vmul.f32 %v1898_v5, %v1207_v36  ;;  %1899 = vpow2.f32 %v1645_v1  ;;  %vm1313_vm8 = vweird.f32 %v1898_v5 }
 0x39d   : > { %v1305_v26 = vsel %vm1302_vm7, %v1304_v6, %v1300_v4  ;;  %1901 = vrcp.f32 %v1208_v9  ;;  %vm1314_vm10 = vmor %vm1312_vm9, %vm1313_vm8  ;;  %v1333_v51 = vand.u32 2147483648, %v1208_v9  ;;  %v1331_v0 = vand.u32 2147483647, %v1208_v9 }
 0x39e   : > { %1462 = vst [vmem:[%s2936_s5 + $0x28] sm:$0xff] %v1305_v26  ;;  %v1309_v38 = vsub.f32 1.0, %v1308_v39  ;;  %vm1327_vm13 = vweird.f32 %v1208_v9 }
 0x39f   : > { %v1334_v29 = vor.u32 1.1754944e-38, %v1333_v51  ;;  %vm1332_vm15 = vcmp.eq.f32.partialorder %v1331_v0, 8.507059e+37 }
 0x3a0   : > { %v1310_v61 = vmul.f32 %v1898_v5, %v1309_v38 }
 0x3a1   : > { %v1132_v8 = vpop.f32.mrf.mxu0 }
 0x3a2   : > { %v1900_v62 = vpop.eup %1899  ;;  %v1311_v34 = vadd.f32 %v1898_v5, %v1310_v61  ;;  %v1646_v47 = vmul.f32 -1.442695, %v1132_v8 }
 0x3a3   : > { %v1902_v19 = vpop.eup %1901  ;;  %v1209_v12 = vadd.f32 1.0, %v1900_v62 }
 0x3a4   : > { %v1315_v25 = vsel %vm1314_vm10, %v1898_v5, %v1311_v34  ;;  %v1323_v45 = vmul.f32 %v1902_v19, %v1208_v9  ;;  %1903 = vpow2.f32 %v1646_v47  ;;  %vm1328_vm12 = vweird.f32 %v1902_v19 }
 0x3a5   : > { %v1320_v46 = vsel %vm1317_vm11, %v1319_v37, %v1315_v25  ;;  %1905 = vrcp.f32 %v1209_v12  ;;  %vm1329_vm14 = vmor %vm1327_vm13, %vm1328_vm12  ;;  %v1348_v17 = vand.u32 2147483648, %v1209_v12  ;;  %v1346_v33 = vand.u32 2147483647, %v1209_v12 }
 0x3a6   : > { %1463 = vst [vmem:[%s2936_s5 + $0x30] sm:$0xff] %v1320_v46  ;;  %v1324_v56 = vsub.f32 1.0, %v1323_v45  ;;  %vm1342_vm1 = vweird.f32 %v1209_v12 }
 0x3a7   : > { %v1349_v55 = vor.u32 1.1754944e-38, %v1348_v17  ;;  %vm1347_vm3 = vcmp.eq.f32.partialorder %v1346_v33, 8.507059e+37 }
 0x3a8   : > { %v1325_v18 = vmul.f32 %v1902_v19, %v1324_v56 }
 0x3a9   : > { %v1135_v23 = vpop.f32.mrf.mxu0 }
 0x3aa   : > { %v1904_v53 = vpop.eup %1903  ;;  %v1326_v28 = vadd.f32 %v1902_v19, %v1325_v18  ;;  %v1647_v27 = vmul.f32 -1.442695, %v1135_v23 }
 0x3ab   : > { %v1906_v2 = vpop.eup %1905  ;;  %v1210_v3 = vadd.f32 1.0, %v1904_v53 }
 0x3ac   : > { %v1330_v42 = vsel %vm1329_vm14, %v1902_v19, %v1326_v28  ;;  %v1338_v7 = vmul.f32 %v1906_v2, %v1209_v12  ;;  %1907 = vpow2.f32 %v1647_v27  ;;  %vm1343_vm0 = vweird.f32 %v1906_v2 }
 0x3ad   : > { %v1335_v11 = vsel %vm1332_vm15, %v1334_v29, %v1330_v42  ;;  %1909 = vrcp.f32 %v1210_v3  ;;  %vm1344_vm2 = vmor %vm1342_vm1, %vm1343_vm0  ;;  %v1363_v54 = vand.u32 2147483648, %v1210_v3  ;;  %v1361_v16 = vand.u32 2147483647, %v1210_v3 }
 0x3ae   : > { %1464 = vst [vmem:[%s2936_s5 + $0x38] sm:$0xff] %v1335_v11  ;;  %v1339_v13 = vsub.f32 1.0, %v1338_v7  ;;  %vm1357_vm5 = vweird.f32 %v1210_v3 }
 0x3af   : > { %v1364_v21 = vor.u32 1.1754944e-38, %v1363_v54  ;;  %vm1362_vm7 = vcmp.eq.f32.partialorder %v1361_v16, 8.507059e+37 }
 0x3b0   : > { %v1340_v49 = vmul.f32 %v1906_v2, %v1339_v13 }
 0x3b1   : > { %v1138_v59 = vpop.f32.mrf.mxu0 }
 0x3b2   : > { %v1908_v40 = vpop.eup %1907  ;;  %v1341_v41 = vadd.f32 %v1906_v2, %v1340_v49  ;;  %v1648_v48 = vmul.f32 -1.442695, %v1138_v59 }
 0x3b3   : > { %v1910_v50 = vpop.eup %1909  ;;  %v1211_v57 = vadd.f32 1.0, %v1908_v40 }
 0x3b4   : > { %v1345_v31 = vsel %vm1344_vm2, %v1906_v2, %v1341_v41  ;;  %v1353_v10 = vmul.f32 %v1910_v50, %v1210_v3  ;;  %1911 = vpow2.f32 %v1648_v48  ;;  %vm1358_vm4 = vweird.f32 %v1910_v50 }
 0x3b5   : > { %v1350_v30 = vsel %vm1347_vm3, %v1349_v55, %v1345_v31  ;;  %1913 = vrcp.f32 %v1211_v57  ;;  %vm1359_vm6 = vmor %vm1357_vm5, %vm1358_vm4  ;;  %v1378_v1 = vand.u32 2147483648, %v1211_v57  ;;  %v1376_v6 = vand.u32 2147483647, %v1211_v57 }
 0x3b6   : > { %1465 = vst [vmem:[%s2936_s5 + $0x40] sm:$0xff] %v1350_v30  ;;  %v1354_v44 = vsub.f32 1.0, %v1353_v10  ;;  %vm1372_vm9 = vweird.f32 %v1211_v57 }
 0x3b7   : > { %v1379_v24 = vor.u32 1.1754944e-38, %v1378_v1  ;;  %vm1377_vm11 = vcmp.eq.f32.partialorder %v1376_v6, 8.507059e+37 }
 0x3b8   : > { %v1355_v22 = vmul.f32 %v1910_v50, %v1354_v44 }
 0x3b9   : > { %v1141_v36 = vpop.f32.mrf.mxu0 }
 0x3ba   : > { %v1912_v14 = vpop.eup %1911  ;;  %v1356_v52 = vadd.f32 %v1910_v50, %v1355_v22  ;;  %v1649_v35 = vmul.f32 -1.442695, %v1141_v36 }
 0x3bb   : > { %v1914_v43 = vpop.eup %1913  ;;  %v1212_v58 = vadd.f32 1.0, %v1912_v14 }
 0x3bc   : > { %v1360_v60 = vsel %vm1359_vm6, %v1910_v50, %v1356_v52  ;;  %v1368_v20 = vmul.f32 %v1914_v43, %v1211_v57  ;;  %1915 = vpow2.f32 %v1649_v35  ;;  %vm1373_vm8 = vweird.f32 %v1914_v43 }
 0x3bd   : > { %v1365_v32 = vsel %vm1362_vm7, %v1364_v21, %v1360_v60  ;;  %1917 = vrcp.f32 %v1212_v58  ;;  %vm1374_vm10 = vmor %vm1372_vm9, %vm1373_vm8  ;;  %v1393_v47 = vand.u32 2147483648, %v1212_v58  ;;  %v1391_v37 = vand.u32 2147483647, %v1212_v58 }
 0x3be   : > { %1466 = vst [vmem:[%s2936_s5 + $0x48] sm:$0xff] %v1365_v32  ;;  %v1369_v63 = vsub.f32 1.0, %v1368_v20  ;;  %vm1387_vm13 = vweird.f32 %v1212_v58 }
 0x3bf   : > { %v1394_v51 = vor.u32 1.1754944e-38, %v1393_v47  ;;  %vm1392_vm15 = vcmp.eq.f32.partialorder %v1391_v37, 8.507059e+37 }
 0x3c0   : > { %v1370_v5 = vmul.f32 %v1914_v43, %v1369_v63 }
 0x3c1   : > { %v1144_v9 = vpop.f32.mrf.mxu0 }
 0x3c2   : > { %v1916_v4 = vpop.eup %1915  ;;  %v1371_v39 = vadd.f32 %v1914_v43, %v1370_v5  ;;  %v1650_v26 = vmul.f32 -1.442695, %v1144_v9 }
 0x3c3   : > { %v1918_v38 = vpop.eup %1917  ;;  %v1213_v61 = vadd.f32 1.0, %v1916_v4 }
 0x3c4   : > { %v1375_v15 = vsel %vm1374_vm10, %v1914_v43, %v1371_v39  ;;  %v1383_v8 = vmul.f32 %v1918_v38, %v1212_v58  ;;  %1919 = vpow2.f32 %v1650_v26  ;;  %vm1388_vm12 = vweird.f32 %v1918_v38 }
 0x3c5   : > { %v1380_v62 = vsel %vm1377_vm11, %v1379_v24, %v1375_v15  ;;  %1921 = vrcp.f32 %v1213_v61  ;;  %vm1389_vm14 = vmor %vm1387_vm13, %vm1388_vm12  ;;  %v1408_v27 = vand.u32 2147483648, %v1213_v61  ;;  %v1406_v29 = vand.u32 2147483647, %v1213_v61 }
 0x3c6   : > { %1467 = vst [vmem:[%s2936_s5 + $0x50] sm:$0xff] %v1380_v62  ;;  %v1384_v34 = vsub.f32 1.0, %v1383_v8  ;;  %vm1402_vm1 = vweird.f32 %v1213_v61 }
 0x3c7   : > { %v1409_v17 = vor.u32 1.1754944e-38, %v1408_v27  ;;  %vm1407_vm3 = vcmp.eq.f32.partialorder %v1406_v29, 8.507059e+37 }
 0x3c8   : > { %v1385_v19 = vmul.f32 %v1918_v38, %v1384_v34 }
 0x3c9   : > { %v1147_v12 = vpop.f32.mrf.mxu0 }
 0x3ca   : > { %v1920_v25 = vpop.eup %1919  ;;  %v1386_v45 = vadd.f32 %v1918_v38, %v1385_v19  ;;  %v1651_v46 = vmul.f32 -1.442695, %v1147_v12 }
 0x3cb   : > { %v1922_v56 = vpop.eup %1921  ;;  %v1214_v18 = vadd.f32 1.0, %v1920_v25 }
 0x3cc   : > { %v1390_v0 = vsel %vm1389_vm14, %v1918_v38, %v1386_v45  ;;  %v1398_v23 = vmul.f32 %v1922_v56, %v1213_v61  ;;  %1923 = vpow2.f32 %v1651_v46  ;;  %vm1403_vm0 = vweird.f32 %v1922_v56 }
 0x3cd   : > { %v1395_v53 = vsel %vm1392_vm15, %v1394_v51, %v1390_v0  ;;  %1925 = vrcp.f32 %v1214_v18  ;;  %vm1404_vm2 = vmor %vm1402_vm1, %vm1403_vm0  ;;  %v1423_v48 = vand.u32 2147483648, %v1214_v18  ;;  %v1421_v55 = vand.u32 2147483647, %v1214_v18 }
 0x3ce   : > { %1468 = vst [vmem:[%s2936_s5 + $0x58] sm:$0xff] %v1395_v53  ;;  %v1399_v28 = vsub.f32 1.0, %v1398_v23  ;;  %vm1417_vm5 = vweird.f32 %v1214_v18 }
 0x3cf   : > { %v1424_v30 = vor.u32 1.1754944e-38, %v1423_v48  ;;  %vm1422_vm7 = vcmp.eq.f32.partialorder %v1421_v55, 8.507059e+37 }
 0x3d0   : > { %v1400_v2 = vmul.f32 %v1922_v56, %v1399_v28 }
 0x3d1   : > { %v1150_v3 = vpop.f32.mrf.mxu0 }
 0x3d2   : > { %v1924_v42 = vpop.eup %1923  ;;  %v1401_v7 = vadd.f32 %v1922_v56, %v1400_v2  ;;  %v1652_v11 = vmul.f32 -1.442695, %v1150_v3 }
 0x3d3   : > { %v1926_v13 = vpop.eup %1925  ;;  %v1215_v49 = vadd.f32 1.0, %v1924_v42 }
 0x3d4   : > { %v1405_v33 = vsel %vm1404_vm2, %v1922_v56, %v1401_v7  ;;  %v1413_v59 = vmul.f32 %v1926_v13, %v1214_v18  ;;  %1927 = vpow2.f32 %v1652_v11  ;;  %vm1418_vm4 = vweird.f32 %v1926_v13 }
 0x3d5   : > { %v1410_v40 = vsel %vm1407_vm3, %v1409_v17, %v1405_v33  ;;  %1929 = vrcp.f32 %v1215_v49  ;;  %vm1419_vm6 = vmor %vm1417_vm5, %vm1418_vm4  ;;  %v1438_v14 = vand.u32 2147483648, %v1215_v49  ;;  %v1436_v35 = vand.u32 2147483647, %v1215_v49 }
 0x3d6   : > { %1469 = vst [vmem:[%s2936_s5 + $0x60] sm:$0xff] %v1410_v40  ;;  %v1414_v41 = vsub.f32 1.0, %v1413_v59  ;;  %vm1432_vm9 = vweird.f32 %v1215_v49 }
 0x3d7   : > { %v1439_v58 = vor.u32 1.1754944e-38, %v1438_v14  ;;  %vm1437_vm11 = vcmp.eq.f32.partialorder %v1436_v35, 8.507059e+37 }
 0x3d8   : > { %v1415_v50 = vmul.f32 %v1926_v13, %v1414_v41 }
 0x3da   : > { %v1928_v57 = vpop.eup %1927  ;;  %v1416_v31 = vadd.f32 %v1926_v13, %v1415_v50 }
 0x3db   : > { %v1930_v10 = vpop.eup %1929  ;;  %v1216_v44 = vadd.f32 1.0, %v1928_v57 }
 0x3dc   : > { %v1420_v54 = vsel %vm1419_vm6, %v1926_v13, %v1416_v31  ;;  %v1428_v22 = vmul.f32 %v1930_v10, %v1215_v49  ;;  %vm1433_vm8 = vweird.f32 %v1930_v10 }
 0x3dd   : > { %v1425_v16 = vsel %vm1422_vm7, %v1424_v30, %v1420_v54  ;;  %1931 = vrcp.f32 %v1216_v44  ;;  %vm1434_vm10 = vmor %vm1432_vm9, %vm1433_vm8  ;;  %v1453_v1 = vand.u32 2147483648, %v1216_v44  ;;  %v1451_v6 = vand.u32 2147483647, %v1216_v44 }
 0x3de   : > { %1470 = vst [vmem:[%s2936_s5 + $0x68] sm:$0xff] %v1425_v16  ;;  %v1429_v36 = vsub.f32 1.0, %v1428_v22  ;;  %vm1447_vm13 = vweird.f32 %v1216_v44 }
 0x3df   : > { %v1454_v4 = vor.u32 1.1754944e-38, %v1453_v1  ;;  %vm1452_vm15 = vcmp.eq.f32.partialorder %v1451_v6, 8.507059e+37 }
 0x3e0   : > { %v1430_v52 = vmul.f32 %v1930_v10, %v1429_v36 }
 0x3e2   : > { %v1431_v43 = vadd.f32 %v1930_v10, %v1430_v52 }
 0x3e3   : > { %v1932_v21 = vpop.eup %1931 }
 0x3e4   : > { %v1435_v60 = vsel %vm1434_vm10, %v1930_v10, %v1431_v43  ;;  %v1443_v20 = vmul.f32 %v1932_v21, %v1216_v44  ;;  %vm1448_vm12 = vweird.f32 %v1932_v21 }
 0x3e5   : > { %v1440_v32 = vsel %vm1437_vm11, %v1439_v58, %v1435_v60  ;;  %vm1449_vm14 = vmor %vm1447_vm13, %vm1448_vm12 }
 0x3e6   : > { %1471 = vst [vmem:[%s2936_s5 + $0x70] sm:$0xff] %v1440_v32  ;;  %v1444_v63 = vsub.f32 1.0, %v1443_v20 }
 0x3e8   : > { %v1445_v5 = vmul.f32 %v1932_v21, %v1444_v63 }
 0x3ea   : > { %v1446_v9 = vadd.f32 %v1932_v21, %v1445_v5 }
 0x3ec   : > { %v1450_v39 = vsel %vm1449_vm14, %v1932_v21, %v1446_v9 }
 0x3ed   : > { %v1455_v26 = vsel %vm1452_vm15, %v1454_v4, %v1450_v39 }
 0x3ee   : > { %1472 = vst [vmem:[%s2936_s5 + $0x78] sm:$0xff] %v1455_v26 }
 0x3ef   : > { %2080 = shalt.err (!%p2077_p1)
}
 0x3f0   : > { %s2219_s2 = smov 128   ;;  %s2220_s14 = smov 256  }
 0x3f1   : > { %s2221_s5 = smov 8  }
 0x3f2   : > { %1722 = dma.vmem_to_hbm [thread:$0]  (%p2342_p6), %s1489_s19, 2048, %s1491_s11, %s1474_s12, %s2219_s2, %s2220_s14, %s2221_s5  }
 0x3f3 PF: > { %s3083_s30 = sld [smem:[#allocation16_spill]]  ;;  %p1747_p3 = scmp.ge.s32.totalorder %s2211_s10, 2 }
 0x3f5   : > { %p1739_p7 = pnand %p1747_p3, %p2348_p10 }
 0x3f7   : > { %p1740_p2 = pneg %p1739_p7 }
 0x3f9   : > { %s1505_s15 = sand.u32 1, %s3083_s30  }
 0x3fa   : > { %s1506_s25 = scalar_lea.sflag [#allocation4], %s1505_s15 }
 0x3fb   : > { %2154 = dma.done.wait (%p1740_p2), %s1506_s25, 2048  }
 0x3fc   : > { %2156 = vsyncadd (%p1740_p2), %s1506_s25, 4294965248  ;;  %s26_s10 = sadd.s32 1, %s2211_s10   ;;  %s3086_s17 = sld [smem:[#allocation17_spill]] }
 0x3fd   : > { %p2977_p9 = scmp.ge.s32.totalorder %s26_s10, 6   ;;  %s3087_s19 = smov %s2426_s21 }
 0x3fe   : > { %s3088_s24 = sld [smem:[#allocation18_spill]]  ;;  %s3091_s11 = smov %s3107_s27 }
 0x3ff   : > { %s3089_s30 = sld [smem:[#allocation21_spill]]  ;;  %s3093_s22 = smov %s2167_s23 }
 0x400   : > { %s3090_s8 = sld [smem:[#allocation25_spill]]  ;;  %s3094_s23 = smov %s3087_s19 }
 0x401   : > { %s3095_s25 = smov %s2179_s26  ;;  %s3096_s26 = smov %s2416_s20 }
 0x402   : > { %s3092_s21 = smov %s3086_s17  ;;  %s3097_s27 = smov %s2187_s28 }
 0x403   : > { %s3098_s28 = smov %s2191_s29  ;;  %s3099_s29 = smov %s2423_s7 }
 0x404   : > { %s3100_s7 = smov %s2207_s9  ;;  %s3101_s9 = smov %s3091_s11 }
 0x405   :  { %25 = sbr.rel (!%p2977_p9) target bundleno = 20 (0x14), region = 110 }
 0x40a   :  { %1512 = vsyncpa [#allocation3], 1 }
 0x40b   :  { %1514 = vsyncpa [#allocation3 + $0x1], 1 }
 0x40c   :  { %1515 = vsyncpa [#allocation6], 1 }
 0x40d   :  { %1517 = vsyncpa [#allocation6 + $0x1], 1 }
 0x40e   :  { %1518 = vsyncpa [#allocation9], 1 }
 0x40f   :  { %1519 = vsyncpa [#allocation4], 1 }
 0x410   :  { %1521 = vsyncpa [#allocation4 + $0x1], 1 }

</bundles_post_ra>
